<compile_context>
chip_gen: v7x
topology: tpu7x:2x2x1
jax: 0.10.0
libtpu: 0.0.40
codegen_flags: <defaults>
</compile_context>

<pallas_src>
import functools
import math

import jax
import jax.numpy as jnp
from jax.experimental import pallas as pl
from jax.experimental.pallas import tpu as pltpu

HIDDEN = 512
LANE = 128


def _pad_to(n, m):
    return ((n + m - 1) // m) * m


def _x_pad(x_dim):
    # lane-dense K dim for the fused x matmul; 256-aligned when it matters (v6e/v7x MXU).
    xp = _pad_to(max(x_dim, LANE), LANE)
    if xp > LANE:
        xp = _pad_to(xp, 2 * LANE)
    return xp


def _softmax(x, approx):
    m = jnp.max(x, axis=-1, keepdims=True)
    e = jnp.exp(x - m)
    s = jnp.sum(e, axis=-1, keepdims=True)
    if approx:
        return e * pl.reciprocal(s, approx=True)
    return e / s  # exact divide: rows sum to 1 to ~f32 precision


def _softplus(x):
    # numerically stable log(1 + exp(x))
    return jnp.maximum(x, 0.0) + jnp.log1p(jnp.exp(-jnp.abs(x)))


def inference_net_kernel(
    x_ref, g_ref, eps_ref,
    w13_ref, b1_ref, b3_ref, w2_ref, b2_ref, wl_ref, bl_ref,
    w3y_ref, w4_ref, b4_ref, wh_ref, bh_ref,
    *out_refs,
    inv_temperature, y_dim, z_pad, z_only,
):
    xb = x_ref[...]  # bf16, lane-padded (padded lanes are zero)

    # fused x @ [W1 | W3x]: one LHS push over the largest K dim instead of two
    hx = jnp.dot(xb, w13_ref[...], preferred_element_type=jnp.float32)

    # ---------------- q(y | x) ----------------
    h = jnp.maximum(hx[:, :HIDDEN] + b1_ref[...], 0.0)
    h = jnp.maximum(
        jnp.dot(h.astype(jnp.bfloat16), w2_ref[...],
                preferred_element_type=jnp.float32) + b2_ref[...], 0.0)
    logits = (jnp.dot(h.astype(jnp.bfloat16), wl_ref[...],
                      preferred_element_type=jnp.float32) + bl_ref[...])

    # mask padded lanes (y_dim .. 128) so softmax runs over the real classes only
    lane_ids = jax.lax.broadcasted_iota(jnp.int32, logits.shape, 1)
    valid = lane_ids < y_dim
    neg_big = jnp.float32(-1e30)

    # Gumbel-softmax sample (hard=False path; GMVAENet.forward uses hard=0).
    # TODO(synk): straight-through hard=True path (argmax one-hot + ST estimator)
    # is not implemented since GMVAENet.forward() uses hard=0.
    y = _softmax(jnp.where(valid, (logits + g_ref[...]) * inv_temperature, neg_big),
                 approx=True)

    # ---------------- q(z | x, y) ----------------
    # concat(x, y) @ W3 == x @ W3x + y @ W3y   (padded y lanes are exactly 0)
    h2 = (hx[:, HIDDEN:]
          + jnp.dot(y.astype(jnp.bfloat16), w3y_ref[...],
                    preferred_element_type=jnp.float32)
          + b3_ref[...])
    h2 = jnp.maximum(h2, 0.0)
    h2 = jnp.maximum(
        jnp.dot(h2.astype(jnp.bfloat16), w4_ref[...],
                preferred_element_type=jnp.float32) + b4_ref[...], 0.0)

    # fused (mu | var) head: one lane-dense N = 2*z_pad matmul, 128-aligned splits
    head = (jnp.dot(h2.astype(jnp.bfloat16), wh_ref[...],
                    preferred_element_type=jnp.float32) + bh_ref[...])
    mu = head[:, :z_pad]
    var = _softplus(head[:, z_pad:])
    z = mu + eps_ref[...] * jnp.sqrt(var + 1e-10)

    if z_only:
        (z_ref,) = out_refs
        z_ref[...] = z
    else:
        logits_ref, prob_ref, y_ref, mu_ref, var_ref, z_ref = out_refs
        # exact-divide softmax (prob_cat typically feeds KL/ELBO terms)
        prob = _softmax(jnp.where(valid, logits, neg_big), approx=False)
        logits_ref[...] = logits
        prob_ref[...] = prob
        y_ref[...] = y
        mu_ref[...] = mu
        var_ref[...] = var
        z_ref[...] = z


def _const_spec(shape):
    """VMEM-resident weight block (constant index_map). Single-buffered: a constant
    index makes double-buffering pure VMEM waste (matters on v5e 16 MiB scoped /
    v7x 64 MiB physical)."""
    idx = lambda i: (0, 0)
    try:
        return pl.BlockSpec(shape, idx, pipeline_mode=pl.Buffered(1))
    except (TypeError, ValueError):  # older jax without pipeline_mode
        return pl.BlockSpec(shape, idx)


def inference_net_forward(x, params, key, temperature=1.0, z_only=False):
    """InferenceNet.forward.

    x: (B, x_dim) f32/bf16.  Noise (gumbel uniforms, reparam normals) is generated
    here from `key` directly at the padded shapes (as in the torch module, which
    draws noise internally).  If z_only=True only the gaussian latent is produced.
    """
    B, x_dim = x.shape
    xp = params["w13"].shape[0]         # padded x width (K of fused x matmul)
    yp = params["wl"].shape[1]          # padded y width (128)
    zp = params["wh"].shape[1] // 2     # padded z width (128)
    y_dim = params["y_dim"]
    z_dim = params["z_dim"]
    assert x_dim <= xp

    # --- batch tiling: big tiles for big batches; >=2 grid steps otherwise (v7x megacore),
    # sublane tile always a multiple of 8 (unmasked (8,128) tiles) ---
    if B >= 1024:
        tb = 512
    else:
        tb = max(8, _pad_to(-(-B // 2), 8))
    b_pad = _pad_to(B, tb)
    grid = (b_pad // tb,)

    # --- inputs generated / cast at the padded shapes (no extra pad/copy ops) ---
    kg, ke = jax.random.split(key)
    u = jax.random.uniform(kg, (b_pad, yp), jnp.float32)
    g = -jnp.log(-jnp.log(u + 1e-20) + 1e-20)            # wrapper-side gumbel noise
    eps = jax.random.normal(ke, (b_pad, zp), jnp.float32)

    xb = x.astype(jnp.bfloat16)                           # halve the largest input DMA
    if b_pad != B or xp != x_dim:
        x_p = jnp.zeros((b_pad, xp), jnp.bfloat16).at[:B, :x_dim].set(xb)
    else:
        x_p = xb

    weight_args = (
        params["w13"], params["b1"], params["b3"],
        params["w2"], params["b2"], params["wl"], params["bl"],
        params["w3y"], params["w4"], params["b4"],
        params["wh"], params["bh"],
    )
    in_args = (x_p, g, eps) + weight_args

    def io_spec(feat):
        return pl.BlockSpec((tb, feat), lambda i: (i, 0))

    in_specs = ([io_spec(xp), io_spec(yp), io_spec(zp)]
                + [_const_spec(a.shape) for a in weight_args])

    if z_only:
        out_specs = (io_spec(zp),)
        out_shape = (jax.ShapeDtypeStruct((b_pad, zp), jnp.float32),)
    else:
        out_specs = (io_spec(yp), io_spec(yp), io_spec(yp),
                     io_spec(zp), io_spec(zp), io_spec(zp))
        out_shape = tuple(jax.ShapeDtypeStruct((b_pad, n), jnp.float32)
                          for n in (yp, yp, yp, zp, zp, zp))

    # --- scheduler hint + VMEM budget ---
    flops = 2 * b_pad * (xp * 2 * HIDDEN + 2 * HIDDEN * HIDDEN
                         + HIDDEN * yp + yp * HIDDEN + HIDDEN * 2 * zp)
    transcendentals = b_pad * ((1 if z_only else 2) * yp + 4 * zp)
    weight_bytes = sum(int(a.size) * a.dtype.itemsize for a in weight_args)
    out_bytes = sum(math.prod(s.shape) * 4 for s in out_shape)
    io_bytes = int(x_p.size) * 2 + 4 * (int(g.size) + int(eps.size)) + out_bytes
    cost = pl.CostEstimate(flops=int(flops), transcendentals=int(transcendentals),
                           bytes_accessed=int(weight_bytes + io_bytes))

    tile_in = tb * (2 * xp + 4 * (yp + zp))                       # x bf16, g/eps f32
    tile_out = tb * 4 * (zp if z_only else 3 * yp + 3 * zp)
    tile_interm = tb * 4 * (2 * HIDDEN + 2 * HIDDEN + 2 * zp + 4 * yp + 4 * zp)
    vmem_est = 2 * tile_in + 2 * tile_out + weight_bytes + tile_interm
    vmem_limit = int(min(56 * 1024 * 1024, max(32 * 1024 * 1024, 2 * vmem_est)))

    kernel = functools.partial(
        inference_net_kernel,
        inv_temperature=float(1.0 / temperature),
        y_dim=int(y_dim),
        z_pad=int(zp),
        z_only=bool(z_only),
    )

    outs = pl.pallas_call(
        kernel,
        grid=grid,
        in_specs=in_specs,
        out_specs=out_specs,
        out_shape=out_shape,
        compiler_params=pltpu.CompilerParams(
            dimension_semantics=("parallel",),
            vmem_limit_bytes=vmem_limit),
        cost_estimate=cost,
    )(*in_args)

    if z_only:
        return {"gaussian": outs[0][:B, :z_dim]}

    logits, prob, y, mu, var, z = outs
    return {
        "mean": mu[:B, :z_dim],
        "var": var[:B, :z_dim],
        "gaussian": z[:B, :z_dim],
        "logits": logits[:B, :y_dim],
        "prob_cat": prob[:B, :y_dim],
        "categorical": y[:B, :y_dim],
    }


def gmvaenet_forward(x, params, key, temperature=1.0, hard=0):
    """GMVAENet.forward: flatten x, run the inference net, return the gaussian latent z.

    z-only kernel mode: only z is declared/stored and the prob softmax is skipped."""
    # TODO(synk): hard=True straight-through gumbel path not implemented (forward uses hard=0).
    B = x.shape[0]
    x_flat = x.reshape(B, -1)
    out_inf = inference_net_forward(x_flat, params, key, temperature, z_only=True)
    return out_inf["gaussian"]


def init_params(key, x_dim, z_dim, y_dim, hidden=HIDDEN):
    """Xavier-normal weights / zero biases (as in GMVAENet.__init__), stored in the kernel
    layout: (in, out) bf16 weights, fused K-padded [W1|W3x], lane-padded logits / W3y
    heads, fused lane-padded (mu|var) head."""
    assert hidden == HIDDEN
    xp = _x_pad(x_dim)
    yp = _pad_to(max(y_dim, LANE), LANE)
    zp = _pad_to(max(z_dim, LANE), LANE)
    keys = jax.random.split(key, 7)

    def xavier(k, fan_in, fan_out):
        std = math.sqrt(2.0 / (fan_in + fan_out))
        return std * jax.random.normal(k, (fan_in, fan_out), jnp.float32)

    w1 = xavier(keys[0], x_dim, hidden)
    w2 = xavier(keys[1], hidden, hidden)
    wl = xavier(keys[2], hidden, y_dim)
    w3 = xavier(keys[3], x_dim + y_dim, hidden)
    w4 = xavier(keys[4], hidden, hidden)
    wmu = xavier(keys[5], hidden, z_dim)
    wvar = xavier(keys[6], hidden, z_dim)

    def zeros(n):
        return jnp.zeros((1, n), jnp.float32)

    # fused, K-padded [W1 | W3x]; lane-padded logits head and y-branch of W3; fused (mu|var)
    w13 = jnp.zeros((xp, 2 * hidden), jnp.float32)
    w13 = w13.at[:x_dim, :hidden].set(w1).at[:x_dim, hidden:].set(w3[:x_dim])
    wl_pad = jnp.zeros((hidden, yp), jnp.float32).at[:, :y_dim].set(wl)
    w3y_pad = jnp.zeros((yp, hidden), jnp.float32).at[:y_dim].set(w3[x_dim:])
    wh = jnp.zeros((hidden, 2 * zp), jnp.float32)
    wh = wh.at[:, :z_dim].set(wmu).at[:, zp:zp + z_dim].set(wvar)

    def bf(a):
        return a.astype(jnp.bfloat16)

    return dict(
        w13=bf(w13), b1=zeros(hidden), b3=zeros(hidden),
        w2=bf(w2), b2=zeros(hidden),
        wl=bf(wl_pad), bl=zeros(yp),
        w3y=bf(w3y_pad),
        w4=bf(w4), b4=zeros(hidden),
        wh=bf(wh), bh=zeros(2 * zp),
        x_dim=int(x_dim), y_dim=int(y_dim), z_dim=int(z_dim),
    )


if __name__ == "__main__":
    key = jax.random.PRNGKey(0)
    B, C, H, W = 8, 1, 8, 8
    x_dim, z_dim, y_dim = C * H * W, 32, 16

    kx, kn, kp = jax.random.split(key, 3)
    x = jax.random.normal(kx, (B, C, H, W), jnp.float32)
    params = init_params(kp, x_dim, z_dim, y_dim)

    # GMVAENet.forward returns the gaussian latent z (z-only kernel mode)
    z = gmvaenet_forward(x, params, kn, temperature=1.0)
    z = jax.block_until_ready(z)
    assert z.shape == (B, z_dim)
    assert bool(jnp.all(jnp.isfinite(z)))

    # full inference outputs (sanity)
    out = inference_net_forward(x.reshape(B, -1), params, kn, temperature=1.0)
    jax.block_until_ready(out)
    assert out["logits"].shape == (B, y_dim)
    assert out["prob_cat"].shape == (B, y_dim)
    assert out["categorical"].shape == (B, y_dim)
    assert out["mean"].shape == (B, z_dim)
    assert out["var"].shape == (B, z_dim)
    assert out["gaussian"].shape == (B, z_dim)
    # prob_cat now uses an exact divide -> rows sum to 1 to f32 precision
    psum = jnp.sum(out["prob_cat"], axis=-1)
    assert bool(jnp.all(jnp.abs(psum - 1.0) < 1e-3))
    # the stochastic gumbel sample keeps the approximate EUP reciprocal
    ysum = jnp.sum(out["categorical"], axis=-1)
    assert bool(jnp.all(jnp.abs(ysum - 1.0) < 2e-2))

    # batch needing padding + a multi-step "parallel" grid (2 steps -> both v7x TCs)
    B2 = 40
    x2 = jax.random.normal(jax.random.PRNGKey(1), (B2, x_dim), jnp.float32)
    out2 = inference_net_forward(x2, params, jax.random.PRNGKey(2), z_only=True)
    jax.block_until_ready(out2["gaussian"])
    assert out2["gaussian"].shape == (B2, z_dim)
    assert bool(jnp.all(jnp.isfinite(out2["gaussian"])))

    print("KERNEL_OK")
</pallas_src>

<mosaic_0001>
module attributes {stable_mosaic.version = 11 : i64} {
  func.func @inference_net_kernel(%arg0: i32, %arg1: memref<8x128xbf16, #tpu.memory_space<vmem>>, %arg2: memref<8x128xf32, #tpu.memory_space<vmem>>, %arg3: memref<8x128xf32, #tpu.memory_space<vmem>>, %arg4: memref<128x1024xbf16, #tpu.memory_space<vmem>>, %arg5: memref<1x512xf32, #tpu.memory_space<vmem>>, %arg6: memref<1x512xf32, #tpu.memory_space<vmem>>, %arg7: memref<512x512xbf16, #tpu.memory_space<vmem>>, %arg8: memref<1x512xf32, #tpu.memory_space<vmem>>, %arg9: memref<512x128xbf16, #tpu.memory_space<vmem>>, %arg10: memref<1x128xf32, #tpu.memory_space<vmem>>, %arg11: memref<128x512xbf16, #tpu.memory_space<vmem>>, %arg12: memref<512x512xbf16, #tpu.memory_space<vmem>>, %arg13: memref<1x512xf32, #tpu.memory_space<vmem>>, %arg14: memref<512x256xbf16, #tpu.memory_space<vmem>>, %arg15: memref<1x256xf32, #tpu.memory_space<vmem>>, %arg16: memref<8x128xf32, #tpu.memory_space<vmem>>) attributes {dimension_semantics = [#tpu.dimension_semantics<parallel>], iteration_bounds = array<i64: 1>, scalar_prefetch = 0 : i64, scratch_operands = 0 : i64, tpu.core_type = #tpu.core_type<tc>, window_params = [{transform_indices = @transform_0, window_bounds = array<i64: 8, 128>}, {transform_indices = @transform_1, window_bounds = array<i64: 8, 128>}, {transform_indices = @transform_2, window_bounds = array<i64: 8, 128>}, {pipeline_mode = #tpu.pipeline_mode<synchronous>, transform_indices = @transform_3, window_bounds = array<i64: 128, 1024>}, {pipeline_mode = #tpu.pipeline_mode<synchronous>, transform_indices = @transform_4, window_bounds = array<i64: 1, 512>}, {pipeline_mode = #tpu.pipeline_mode<synchronous>, transform_indices = @transform_5, window_bounds = array<i64: 1, 512>}, {pipeline_mode = #tpu.pipeline_mode<synchronous>, transform_indices = @transform_6, window_bounds = array<i64: 512, 512>}, {pipeline_mode = #tpu.pipeline_mode<synchronous>, transform_indices = @transform_7, window_bounds = array<i64: 1, 512>}, {pipeline_mode = #tpu.pipeline_mode<synchronous>, transform_indices = @transform_8, window_bounds = array<i64: 512, 128>}, {pipeline_mode = #tpu.pipeline_mode<synchronous>, transform_indices = @transform_9, window_bounds = array<i64: 1, 128>}, {pipeline_mode = #tpu.pipeline_mode<synchronous>, transform_indices = @transform_10, window_bounds = array<i64: 128, 512>}, {pipeline_mode = #tpu.pipeline_mode<synchronous>, transform_indices = @transform_11, window_bounds = array<i64: 512, 512>}, {pipeline_mode = #tpu.pipeline_mode<synchronous>, transform_indices = @transform_12, window_bounds = array<i64: 1, 512>}, {pipeline_mode = #tpu.pipeline_mode<synchronous>, transform_indices = @transform_13, window_bounds = array<i64: 512, 256>}, {pipeline_mode = #tpu.pipeline_mode<synchronous>, transform_indices = @transform_14, window_bounds = array<i64: 1, 256>}, {transform_indices = @transform_15, window_bounds = array<i64: 8, 128>}]} {
    %c0 = arith.constant 0 : index
    %c0_0 = arith.constant 0 : index
    %0 = vector.load %arg1[%c0, %c0_0] : memref<8x128xbf16, #tpu.memory_space<vmem>>, vector<8x128xbf16>
    %c0_1 = arith.constant 0 : index
    %c0_2 = arith.constant 0 : index
    %1 = vector.load %arg4[%c0_1, %c0_2] : memref<128x1024xbf16, #tpu.memory_space<vmem>>, vector<128x1024xbf16>
    %cst = arith.constant dense<0.000000e+00> : vector<8x1024xf32>
    %2 = tpu.matmul %0, %1, %cst {dimension_numbers = #tpu.dot_dimension_numbers<[1], [0], [0], [1], [0, 0, 1, 1], [], []>} : vector<8x128xbf16>, vector<128x1024xbf16>, vector<8x1024xf32> -> vector<8x1024xf32>
    %3 = vector.extract_strided_slice %2 {offsets = [0, 0], sizes = [8, 512], strides = [1, 1]} : vector<8x1024xf32> to vector<8x512xf32>
    %c0_3 = arith.constant 0 : index
    %c0_4 = arith.constant 0 : index
    %4 = vector.load %arg5[%c0_3, %c0_4] : memref<1x512xf32, #tpu.memory_space<vmem>>, vector<1x512xf32>
    %5 = vector.broadcast %4 : vector<1x512xf32> to vector<8x512xf32>
    %6 = arith.addf %3, %5 : vector<8x512xf32>
    %cst_5 = arith.constant 0.000000e+00 : f32
    %7 = vector.broadcast %cst_5 : f32 to vector<8x512xf32>
    %8 = arith.maximumf %6, %7 : vector<8x512xf32>
    %9 = arith.truncf %8 : vector<8x512xf32> to vector<8x512xbf16>
    %c0_6 = arith.constant 0 : index
    %c0_7 = arith.constant 0 : index
    %10 = vector.load %arg7[%c0_6, %c0_7] : memref<512x512xbf16, #tpu.memory_space<vmem>>, vector<512x512xbf16>
    %cst_8 = arith.constant dense<0.000000e+00> : vector<8x512xf32>
    %11 = tpu.matmul %9, %10, %cst_8 {dimension_numbers = #tpu.dot_dimension_numbers<[1], [0], [0], [1], [0, 0, 1, 1], [], []>} : vector<8x512xbf16>, vector<512x512xbf16>, vector<8x512xf32> -> vector<8x512xf32>
    %c0_9 = arith.constant 0 : index
    %c0_10 = arith.constant 0 : index
    %12 = vector.load %arg8[%c0_9, %c0_10] : memref<1x512xf32, #tpu.memory_space<vmem>>, vector<1x512xf32>
    %13 = vector.broadcast %12 : vector<1x512xf32> to vector<8x512xf32>
    %14 = arith.addf %11, %13 : vector<8x512xf32>
    %cst_11 = arith.constant 0.000000e+00 : f32
    %15 = vector.broadcast %cst_11 : f32 to vector<8x512xf32>
    %16 = arith.maximumf %14, %15 : vector<8x512xf32>
    %17 = arith.truncf %16 : vector<8x512xf32> to vector<8x512xbf16>
    %c0_12 = arith.constant 0 : index
    %c0_13 = arith.constant 0 : index
    %18 = vector.load %arg9[%c0_12, %c0_13] : memref<512x128xbf16, #tpu.memory_space<vmem>>, vector<512x128xbf16>
    %cst_14 = arith.constant dense<0.000000e+00> : vector<8x128xf32>
    %19 = tpu.matmul %17, %18, %cst_14 {dimension_numbers = #tpu.dot_dimension_numbers<[1], [0], [0], [1], [0, 0, 1, 1], [], []>} : vector<8x512xbf16>, vector<512x128xbf16>, vector<8x128xf32> -> vector<8x128xf32>
    %c0_15 = arith.constant 0 : index
    %c0_16 = arith.constant 0 : index
    %20 = vector.load %arg10[%c0_15, %c0_16] : memref<1x128xf32, #tpu.memory_space<vmem>>, vector<1x128xf32>
    %21 = vector.broadcast %20 : vector<1x128xf32> to vector<8x128xf32>
    %22 = arith.addf %19, %21 : vector<8x128xf32>
    %23 = tpu.iota {dimensions = array<i32: 1>} : vector<8x128xi32>
    %c16_i32 = arith.constant 16 : i32
    %24 = vector.broadcast %c16_i32 : i32 to vector<8x128xi32>
    %25 = arith.cmpi slt, %23, %24 : vector<8x128xi32>
    %c0_17 = arith.constant 0 : index
    %c0_18 = arith.constant 0 : index
    %26 = vector.load %arg2[%c0_17, %c0_18] : memref<8x128xf32, #tpu.memory_space<vmem>>, vector<8x128xf32>
    %27 = arith.addf %22, %26 : vector<8x128xf32>
    %cst_19 = arith.constant 1.000000e+00 : f32
    %28 = vector.broadcast %cst_19 : f32 to vector<8x128xf32>
    %29 = arith.mulf %27, %28 : vector<8x128xf32>
    %cst_20 = arith.constant -1.000000e+30 : f32
    %30 = vector.broadcast %cst_20 : f32 to vector<8x128xf32>
    %31 = arith.select %25, %29, %30 : vector<8x128xi1>, vector<8x128xf32>
    %cst_21 = arith.constant dense<0xFF800000> : vector<8xf32>
    %32 = vector.multi_reduction <maximumf>, %31, %cst_21 [1] : vector<8x128xf32> to vector<8xf32>
    %33 = vector.shape_cast %32 : vector<8xf32> to vector<8x1xf32>
    %34 = vector.broadcast %33 : vector<8x1xf32> to vector<8x128xf32>
    %35 = arith.subf %31, %34 : vector<8x128xf32>
    %36 = math.exp %35 : vector<8x128xf32>
    %cst_22 = arith.constant dense<0.000000e+00> : vector<8xf32>
    %37 = vector.multi_reduction <add>, %36, %cst_22 [1] : vector<8x128xf32> to vector<8xf32>
    %38 = vector.shape_cast %37 : vector<8xf32> to vector<8x1xf32>
    %39 = tpu.reciprocal %38 {approx = true} : vector<8x1xf32> -> vector<8x1xf32>
    %40 = vector.broadcast %39 : vector<8x1xf32> to vector<8x128xf32>
    %41 = arith.mulf %36, %40 : vector<8x128xf32>
    %42 = vector.extract_strided_slice %2 {offsets = [0, 512], sizes = [8, 512], strides = [1, 1]} : vector<8x1024xf32> to vector<8x512xf32>
    %43 = arith.truncf %41 : vector<8x128xf32> to vector<8x128xbf16>
    %c0_23 = arith.constant 0 : index
    %c0_24 = arith.constant 0 : index
    %44 = vector.load %arg11[%c0_23, %c0_24] : memref<128x512xbf16, #tpu.memory_space<vmem>>, vector<128x512xbf16>
    %cst_25 = arith.constant dense<0.000000e+00> : vector<8x512xf32>
    %45 = tpu.matmul %43, %44, %cst_25 {dimension_numbers = #tpu.dot_dimension_numbers<[1], [0], [0], [1], [0, 0, 1, 1], [], []>} : vector<8x128xbf16>, vector<128x512xbf16>, vector<8x512xf32> -> vector<8x512xf32>
    %46 = arith.addf %42, %45 : vector<8x512xf32>
    %c0_26 = arith.constant 0 : index
    %c0_27 = arith.constant 0 : index
    %47 = vector.load %arg6[%c0_26, %c0_27] : memref<1x512xf32, #tpu.memory_space<vmem>>, vector<1x512xf32>
    %48 = vector.broadcast %47 : vector<1x512xf32> to vector<8x512xf32>
    %49 = arith.addf %46, %48 : vector<8x512xf32>
    %cst_28 = arith.constant 0.000000e+00 : f32
    %50 = vector.broadcast %cst_28 : f32 to vector<8x512xf32>
    %51 = arith.maximumf %49, %50 : vector<8x512xf32>
    %52 = arith.truncf %51 : vector<8x512xf32> to vector<8x512xbf16>
    %c0_29 = arith.constant 0 : index
    %c0_30 = arith.constant 0 : index
    %53 = vector.load %arg12[%c0_29, %c0_30] : memref<512x512xbf16, #tpu.memory_space<vmem>>, vector<512x512xbf16>
    %cst_31 = arith.constant dense<0.000000e+00> : vector<8x512xf32>
    %54 = tpu.matmul %52, %53, %cst_31 {dimension_numbers = #tpu.dot_dimension_numbers<[1], [0], [0], [1], [0, 0, 1, 1], [], []>} : vector<8x512xbf16>, vector<512x512xbf16>, vector<8x512xf32> -> vector<8x512xf32>
    %c0_32 = arith.constant 0 : index
    %c0_33 = arith.constant 0 : index
    %55 = vector.load %arg13[%c0_32, %c0_33] : memref<1x512xf32, #tpu.memory_space<vmem>>, vector<1x512xf32>
    %56 = vector.broadcast %55 : vector<1x512xf32> to vector<8x512xf32>
    %57 = arith.addf %54, %56 : vector<8x512xf32>
    %cst_34 = arith.constant 0.000000e+00 : f32
    %58 = vector.broadcast %cst_34 : f32 to vector<8x512xf32>
    %59 = arith.maximumf %57, %58 : vector<8x512xf32>
    %60 = arith.truncf %59 : vector<8x512xf32> to vector<8x512xbf16>
    %c0_35 = arith.constant 0 : index
    %c0_36 = arith.constant 0 : index
    %61 = vector.load %arg14[%c0_35, %c0_36] : memref<512x256xbf16, #tpu.memory_space<vmem>>, vector<512x256xbf16>
    %cst_37 = arith.constant dense<0.000000e+00> : vector<8x256xf32>
    %62 = tpu.matmul %60, %61, %cst_37 {dimension_numbers = #tpu.dot_dimension_numbers<[1], [0], [0], [1], [0, 0, 1, 1], [], []>} : vector<8x512xbf16>, vector<512x256xbf16>, vector<8x256xf32> -> vector<8x256xf32>
    %c0_38 = arith.constant 0 : index
    %c0_39 = arith.constant 0 : index
    %63 = vector.load %arg15[%c0_38, %c0_39] : memref<1x256xf32, #tpu.memory_space<vmem>>, vector<1x256xf32>
    %64 = vector.broadcast %63 : vector<1x256xf32> to vector<8x256xf32>
    %65 = arith.addf %62, %64 : vector<8x256xf32>
    %66 = vector.extract_strided_slice %65 {offsets = [0, 0], sizes = [8, 128], strides = [1, 1]} : vector<8x256xf32> to vector<8x128xf32>
    %67 = vector.extract_strided_slice %65 {offsets = [0, 128], sizes = [8, 128], strides = [1, 1]} : vector<8x256xf32> to vector<8x128xf32>
    %cst_40 = arith.constant 0.000000e+00 : f32
    %68 = vector.broadcast %cst_40 : f32 to vector<8x128xf32>
    %69 = arith.maximumf %67, %68 : vector<8x128xf32>
    %70 = math.absf %67 : vector<8x128xf32>
    %cst_41 = arith.constant 0.000000e+00 : f32
    %71 = vector.broadcast %cst_41 : f32 to vector<8x128xf32>
    %72 = arith.subf %71, %70 : vector<8x128xf32>
    %73 = math.exp %72 : vector<8x128xf32>
    %74 = math.log1p %73 : vector<8x128xf32>
    %75 = arith.addf %69, %74 : vector<8x128xf32>
    %c0_42 = arith.constant 0 : index
    %c0_43 = arith.constant 0 : index
    %76 = vector.load %arg3[%c0_42, %c0_43] : memref<8x128xf32, #tpu.memory_space<vmem>>, vector<8x128xf32>
    %cst_44 = arith.constant 1.000000e-10 : f32
    %77 = vector.broadcast %cst_44 : f32 to vector<8x128xf32>
    %78 = arith.addf %75, %77 : vector<8x128xf32>
    %79 = math.sqrt %78 : vector<8x128xf32>
    %80 = arith.mulf %76, %79 : vector<8x128xf32>
    %81 = arith.addf %66, %80 : vector<8x128xf32>
    %c0_45 = arith.constant 0 : index
    %c0_46 = arith.constant 0 : index
    %82 = vector.load %arg16[%c0_45, %c0_46] : memref<8x128xf32, #tpu.memory_space<vmem>>, vector<8x128xf32>
    tpu.vector_store %arg16[%c0_45, %c0_46], %81 {strides = array<i32>} : memref<8x128xf32, #tpu.memory_space<vmem>>, vector<8x128xf32>,
    return
  }
  func.func @transform_0(%arg0: i32) -> (i32, i32) {
    %c0_i32 = arith.constant 0 : i32
    %c0_i32_0 = arith.constant 0 : i32
    return %arg0, %c0_i32 : i32, i32
  }
  func.func @transform_1(%arg0: i32) -> (i32, i32) {
    %c0_i32 = arith.constant 0 : i32
    %c0_i32_0 = arith.constant 0 : i32
    return %arg0, %c0_i32 : i32, i32
  }
  func.func @transform_2(%arg0: i32) -> (i32, i32) {
    %c0_i32 = arith.constant 0 : i32
    %c0_i32_0 = arith.constant 0 : i32
    return %arg0, %c0_i32 : i32, i32
  }
  func.func @transform_3(%arg0: i32) -> (i32, i32) {
    %c0_i32 = arith.constant 0 : i32
    %c0_i32_0 = arith.constant 0 : i32
    %c0_i32_1 = arith.constant 0 : i32
    return %c0_i32, %c0_i32_0 : i32, i32
  }
  func.func @transform_4(%arg0: i32) -> (i32, i32) {
    %c0_i32 = arith.constant 0 : i32
    %c0_i32_0 = arith.constant 0 : i32
    %c0_i32_1 = arith.constant 0 : i32
    return %c0_i32, %c0_i32_0 : i32, i32
  }
  func.func @transform_5(%arg0: i32) -> (i32, i32) {
    %c0_i32 = arith.constant 0 : i32
    %c0_i32_0 = arith.constant 0 : i32
    %c0_i32_1 = arith.constant 0 : i32
    return %c0_i32, %c0_i32_0 : i32, i32
  }
  func.func @transform_6(%arg0: i32) -> (i32, i32) {
    %c0_i32 = arith.constant 0 : i32
    %c0_i32_0 = arith.constant 0 : i32
    %c0_i32_1 = arith.constant 0 : i32
    return %c0_i32, %c0_i32_0 : i32, i32
  }
  func.func @transform_7(%arg0: i32) -> (i32, i32) {
    %c0_i32 = arith.constant 0 : i32
    %c0_i32_0 = arith.constant 0 : i32
    %c0_i32_1 = arith.constant 0 : i32
    return %c0_i32, %c0_i32_0 : i32, i32
  }
  func.func @transform_8(%arg0: i32) -> (i32, i32) {
    %c0_i32 = arith.constant 0 : i32
    %c0_i32_0 = arith.constant 0 : i32
    %c0_i32_1 = arith.constant 0 : i32
    return %c0_i32, %c0_i32_0 : i32, i32
  }
  func.func @transform_9(%arg0: i32) -> (i32, i32) {
    %c0_i32 = arith.constant 0 : i32
    %c0_i32_0 = arith.constant 0 : i32
    %c0_i32_1 = arith.constant 0 : i32
    return %c0_i32, %c0_i32_0 : i32, i32
  }
  func.func @transform_10(%arg0: i32) -> (i32, i32) {
    %c0_i32 = arith.constant 0 : i32
    %c0_i32_0 = arith.constant 0 : i32
    %c0_i32_1 = arith.constant 0 : i32
    return %c0_i32, %c0_i32_0 : i32, i32
  }
  func.func @transform_11(%arg0: i32) -> (i32, i32) {
    %c0_i32 = arith.constant 0 : i32
    %c0_i32_0 = arith.constant 0 : i32
    %c0_i32_1 = arith.constant 0 : i32
    return %c0_i32, %c0_i32_0 : i32, i32
  }
  func.func @transform_12(%arg0: i32) -> (i32, i32) {
    %c0_i32 = arith.constant 0 : i32
    %c0_i32_0 = arith.constant 0 : i32
    %c0_i32_1 = arith.constant 0 : i32
    return %c0_i32, %c0_i32_0 : i32, i32
  }
  func.func @transform_13(%arg0: i32) -> (i32, i32) {
    %c0_i32 = arith.constant 0 : i32
    %c0_i32_0 = arith.constant 0 : i32
    %c0_i32_1 = arith.constant 0 : i32
    return %c0_i32, %c0_i32_0 : i32, i32
  }
  func.func @transform_14(%arg0: i32) -> (i32, i32) {
    %c0_i32 = arith.constant 0 : i32
    %c0_i32_0 = arith.constant 0 : i32
    %c0_i32_1 = arith.constant 0 : i32
    return %c0_i32, %c0_i32_0 : i32, i32
  }
  func.func @transform_15(%arg0: i32) -> (i32, i32) {
    %c0_i32 = arith.constant 0 : i32
    %c0_i32_0 = arith.constant 0 : i32
    return %arg0, %c0_i32 : i32, i32
  }
}

</mosaic_0001>

<bundles_post_ra>
// kernel: tpu_custom_call.1
= control target key start
LH: loop header
LB: loop body
LE: loop exit
PB: predicated region body
PF: predicated region fallthrough
CT: control target
= control target key end

     0   :  { %20 = vsyncpa [#allocation3], 0  ;;  %s5519_s0 = inlined_call_operand.hbm [shape: bf16[8,128], index: 0, kind: input, shape index: {}]   ;;  %s5520_s1 = inlined_call_operand.hbm [shape: f32[8,128], index: 1, kind: input, shape index: {}]   ;;  %s5521_s2 = inlined_call_operand.hbm [shape: f32[8,128], index: 2, kind: input, shape index: {}]   ;;  %s5522_s3 = inlined_call_operand.hbm [shape: bf16[128,1024], index: 3, kind: input, shape index: {}]   ;;  %s5523_s4 = inlined_call_operand.vmem [shape: f32[1,512], index: 4, kind: input, shape index: {}]   ;;  %s5524_s5 = inlined_call_operand.vmem [shape: f32[1,512], index: 5, kind: input, shape index: {}]   ;;  %s5525_s6 = inlined_call_operand.hbm [shape: bf16[512,512], index: 6, kind: input, shape index: {}]   ;;  %s5526_s7 = inlined_call_operand.vmem [shape: f32[1,512], index: 7, kind: input, shape index: {}]   ;;  %s5527_s8 = inlined_call_operand.hbm [shape: bf16[512,128], index: 8, kind: input, shape index: {}]   ;;  %s5528_s9 = inlined_call_operand.vmem [shape: f32[1,128], index: 9, kind: input, shape index: {}]   ;;  %s5529_s10 = inlined_call_operand.hbm [shape: bf16[128,512], index: 10, kind: input, shape index: {}]   ;;  %s5530_s11 = inlined_call_operand.hbm [shape: bf16[512,512], index: 11, kind: input, shape index: {}]   ;;  %s5531_s12 = inlined_call_operand.vmem [shape: f32[1,512], index: 12, kind: input, shape index: {}]   ;;  %s5532_s13 = inlined_call_operand.hbm [shape: bf16[512,256], index: 13, kind: input, shape index: {}]   ;;  %s5533_s14 = inlined_call_operand.vmem [shape: f32[1,256], index: 14, kind: input, shape index: {}]   ;;  %s5534_s15 = inlined_call_operand.hbm [shape: f32[8,128], index: 15, kind: output, shape index: {}]  }
   0x1   :  { %21 = vsyncpa [#allocation6], 0 }
   0x2   :  { %22 = vsyncpa [#allocation9], 0 }
   0x3   :  { %23 = vsyncpa [#allocation12], 0 }
   0x4   :  { %24 = vsyncpa [#allocation15], 0 }
   0x5   :  { %25 = vsyncpa [#allocation4], 0  ;;  %s5208_s18 = smov [#allocation5]   ;;  %s5209_s20 = smov [#allocation8]  }
   0x6   :  { %s42_s19 = sshll.u32 %s5208_s18, 4  ;;  %s61_s21 = sshll.u32 %s5209_s20, 4  ;;  %s43_s19 = int_to_ptr.vmem [resolvable:$true] %s42_s19  ;;  %s5307_s21 = int_to_ptr.vmem [resolvable:$true] %s61_s21 }
   0x7   :  { %s4976_s24 = scalar_lea.hbm %s5520_s1, 128 }
   0x8   :  { %p4977_p0 = scmp.ne.s32.totalorder %s5520_s1, %s4976_s24  ;;  %p4980_p1 = scmp.lt.u32.totalorder %s4976_s24, %s5520_s1 }
   0xa   :  { %p4982_p2 = pnand %p4980_p1, %p4977_p0 }
   0xc   :  { %4985 = shalt.err (!%p4982_p2)
}
   0xd   :  { %s4986_s29 = scalar_lea.vmem %s43_s19, 128  ;;  %p4991_p4 = scmp.lt.s32.totalorder %s43_s19, %s43_s19 }
   0xe   :  { %p4987_p3 = scmp.ne.s32.totalorder %s43_s19, %s4986_s29  ;;  %p4992_p5 = scmp.lt.s32.totalorder %s4986_s29, %s4986_s29 }
  0x10   :  { %p4993_p6 = por %p4992_p5, %p4991_p4 }
  0x12   :  { %p4994_p7 = pnand %p4993_p6, %p4987_p3 }
  0x14   :  { %4997 = shalt.err (!%p4994_p7)
}
  0x15   :  { %45 = dma.hbm_to_vmem [thread:$0]  %s5520_s1, 128, %s43_s19, [#allocation6]  }
  0x16   :  { %s4998_s20 = scalar_lea.hbm %s5522_s3, 8192 }
  0x17   :  { %p4999_p8 = scmp.ne.s32.totalorder %s5522_s3, %s4998_s20  ;;  %p5002_p9 = scmp.lt.u32.totalorder %s4998_s20, %s5522_s3 }
  0x19   :  { %p5004_p10 = pnand %p5002_p9, %p4999_p8 }
  0x1b   :  { %5007 = shalt.err (!%p5004_p10)
}
  0x1c   :  { %s5008_s26 = scalar_lea.vmem %s5307_s21, 8192  ;;  %p5013_p12 = scmp.lt.s32.totalorder %s5307_s21, %s5307_s21 }
  0x1d   :  { %p5009_p11 = scmp.ne.s32.totalorder %s5307_s21, %s5008_s26  ;;  %p5014_p13 = scmp.lt.s32.totalorder %s5008_s26, %s5008_s26 }
  0x1f   :  { %p5015_p0 = por %p5014_p13, %p5013_p12 }
  0x21   :  { %p5016_p1 = pnand %p5015_p0, %p5009_p11 }
  0x23   :  { %5019 = shalt.err (!%p5016_p1)
}
  0x24   :  { %s5210_s1 = smov 512   ;;  %s5211_s19 = smov 32  }
  0x25   :  { %67 = dma.hbm_to_vmem [thread:$0]  %s5522_s3, 8192, %s5307_s21, [#allocation9], %s5210_s1, %s5210_s1, %s5211_s19  }
  0x26   :  { %s5212_s29 = smov [#allocation11]   ;;  %s5020_s18 = scalar_lea.hbm %s5527_s8, 4096 }
  0x27   :  { %s91_s30 = sshll.u32 %s5212_s29, 4  ;;  %p5021_p2 = scmp.ne.s32.totalorder %s5527_s8, %s5020_s18  ;;  %s92_s30 = int_to_ptr.vmem [resolvable:$true] %s91_s30 }
  0x28   :  { %p5024_p3 = scmp.lt.u32.totalorder %s5020_s18, %s5527_s8 }
  0x2a   :  { %p5026_p4 = pnand %p5024_p3, %p5021_p2 }
  0x2c   :  { %5029 = shalt.err (!%p5026_p4)
}
  0x2d   :  { %s5030_s25 = scalar_lea.vmem %s92_s30, 4096  ;;  %p5035_p6 = scmp.lt.s32.totalorder %s92_s30, %s92_s30 }
  0x2e   :  { %p5031_p5 = scmp.ne.s32.totalorder %s92_s30, %s5030_s25  ;;  %p5036_p7 = scmp.lt.s32.totalorder %s5030_s25, %s5030_s25 }
  0x30   :  { %p5037_p8 = por %p5036_p7, %p5035_p6 }
  0x32   :  { %p5038_p9 = pnand %p5037_p8, %p5031_p5 }
  0x34   :  { %5041 = shalt.err (!%p5038_p9)
}
  0x35   :  { %s5213_s3 = smov 64   ;;  %s5214_s21 = smov 4  }
  0x36   :  { %97 = dma.hbm_to_vmem [thread:$0]  %s5527_s8, 4096, %s92_s30, [#allocation12], %s5213_s3, %s5213_s3, %s5214_s21  }
  0x37   :  { %s5215_s19 = smov [#allocation14]   ;;  %s5216_s28 = smov [#allocation2]  }
  0x38   :  { %s117_s27 = sshll.u32 %s5215_s19, 4  ;;  %s32_s29 = sshll.u32 %s5216_s28, 4  ;;  %s118_s27 = int_to_ptr.vmem [resolvable:$true] %s117_s27  ;;  %s33_s29 = int_to_ptr.vmem [resolvable:$true] %s32_s29 }
  0x39   :  { %s5042_s18 = scalar_lea.hbm %s5530_s11, 16384 }
  0x3a   :  { %p5043_p10 = scmp.ne.s32.totalorder %s5530_s11, %s5042_s18  ;;  %p5046_p11 = scmp.lt.u32.totalorder %s5042_s18, %s5530_s11 }
  0x3c   :  { %p5048_p12 = pnand %p5046_p11, %p5043_p10 }
  0x3e   :  { %5051 = shalt.err (!%p5048_p12)
}
  0x3f   :  { %s5052_s8 = scalar_lea.vmem %s118_s27, 16384  ;;  %p5057_p0 = scmp.lt.s32.totalorder %s118_s27, %s118_s27 }
  0x40   :  { %p5053_p13 = scmp.ne.s32.totalorder %s118_s27, %s5052_s8  ;;  %p5058_p1 = scmp.lt.s32.totalorder %s5052_s8, %s5052_s8 }
  0x42   :  { %p5059_p2 = por %p5058_p1, %p5057_p0 }
  0x44   :  { %p5060_p3 = pnand %p5059_p2, %p5053_p13 }
  0x46   :  { %5063 = shalt.err (!%p5060_p3)
}
  0x47   :  { %s5217_s30 = smov 256   ;;  %s5218_s25 = smov 16  }
  0x48   :  { %123 = dma.hbm_to_vmem [thread:$0]  %s5530_s11, 16384, %s118_s27, [#allocation15], %s5217_s30, %s5217_s30, %s5218_s25  }
  0x49   :  { %s5064_s19 = scalar_lea.hbm %s5519_s0, 64 }
  0x4a   :  { %p5065_p4 = scmp.ne.s32.totalorder %s5519_s0, %s5064_s19  ;;  %p5068_p5 = scmp.lt.u32.totalorder %s5064_s19, %s5519_s0 }
  0x4c   :  { %p5070_p6 = pnand %p5068_p5, %p5065_p4 }
  0x4e   :  { %5073 = shalt.err (!%p5070_p6)
}
  0x4f   :  { %s5074_s20 = scalar_lea.vmem %s33_s29, 64  ;;  %p5079_p8 = scmp.lt.s32.totalorder %s33_s29, %s33_s29 }
  0x50   :  { %p5075_p7 = scmp.ne.s32.totalorder %s33_s29, %s5074_s20  ;;  %p5080_p9 = scmp.lt.s32.totalorder %s5074_s20, %s5074_s20 }
  0x52   :  { %p5081_p10 = por %p5080_p9, %p5079_p8 }
  0x54   :  { %p5082_p11 = pnand %p5081_p10, %p5075_p7 }
  0x56   :  { %5085 = shalt.err (!%p5082_p11)
}
  0x57   :  { %35 = dma.hbm_to_vmem [thread:$0]  %s5519_s0, 64, %s33_s29, [#allocation3]  }
  0x58   :  { %s5219_s22 = smov [#allocation7]   ;;  %s5220_s24 = smov [#allocation10]  }
  0x59   :  { %s52_s23 = sshll.u32 %s5219_s22, 4  ;;  %s77_s8 = sshll.u32 %s5220_s24, 4  ;;  %s53_s23 = int_to_ptr.vmem [resolvable:$true] %s52_s23  ;;  %s78_s8 = int_to_ptr.vmem [resolvable:$true] %s77_s8 }
  0x5a   :  { %s5086_s26 = scalar_lea.hbm %s5521_s2, 128 }
  0x5b   :  { %p5087_p12 = scmp.ne.s32.totalorder %s5521_s2, %s5086_s26  ;;  %p5090_p13 = scmp.lt.u32.totalorder %s5086_s26, %s5521_s2 }
  0x5d   :  { %p5092_p0 = pnand %p5090_p13, %p5087_p12 }
  0x5f   :  { %5095 = shalt.err (!%p5092_p0)
}
  0x60   :  { %s5096_s0 = scalar_lea.vmem %s53_s23, 128  ;;  %p5101_p2 = scmp.lt.s32.totalorder %s53_s23, %s53_s23 }
  0x61   :  { %p5097_p1 = scmp.ne.s32.totalorder %s53_s23, %s5096_s0  ;;  %p5102_p3 = scmp.lt.s32.totalorder %s5096_s0, %s5096_s0 }
  0x63   :  { %p5103_p4 = por %p5102_p3, %p5101_p2 }
  0x65   :  { %p5104_p5 = pnand %p5103_p4, %p5097_p1 }
  0x67   :  { %5107 = shalt.err (!%p5104_p5)
}
  0x68   :  { %55 = dma.hbm_to_vmem [thread:$0]  %s5521_s2, 128, %s53_s23, [#allocation6]  }
  0x69   :  { %s5108_s11 = scalar_lea.hbm %s5525_s6, 16384 }
  0x6a   :  { %p5109_p6 = scmp.ne.s32.totalorder %s5525_s6, %s5108_s11  ;;  %p5112_p7 = scmp.lt.u32.totalorder %s5108_s11, %s5525_s6 }
  0x6c   :  { %p5114_p8 = pnand %p5112_p7, %p5109_p6 }
  0x6e   :  { %5117 = shalt.err (!%p5114_p8)
}
  0x6f   :  { %s5118_s21 = scalar_lea.vmem %s78_s8, 16384  ;;  %p5123_p10 = scmp.lt.s32.totalorder %s78_s8, %s78_s8 }
  0x70   :  { %p5119_p9 = scmp.ne.s32.totalorder %s78_s8, %s5118_s21  ;;  %p5124_p11 = scmp.lt.s32.totalorder %s5118_s21, %s5118_s21 }
  0x72   :  { %p5125_p12 = por %p5124_p11, %p5123_p10 }
  0x74   :  { %p5126_p13 = pnand %p5125_p12, %p5119_p9 }
  0x76   :  { %5129 = shalt.err (!%p5126_p13)
}
  0x77   :  { %83 = dma.hbm_to_vmem [thread:$0]  %s5525_s6, 16384, %s78_s8, [#allocation9], %s5217_s30, %s5217_s30, %s5218_s25  }
  0x78   :  { %s5221_s26 = smov [#allocation13]   ;;  %s5222_s19 = smov [#allocation16]  }
  0x79   :  { %s105_s1 = sshll.u32 %s5221_s26, 4  ;;  %s131_s28 = sshll.u32 %s5222_s19, 4  ;;  %s106_s1 = int_to_ptr.vmem [resolvable:$true] %s105_s1  ;;  %s132_s28 = int_to_ptr.vmem [resolvable:$true] %s131_s28 }
  0x7a   :  { %s5130_s29 = scalar_lea.hbm %s5529_s10, 4096 }
  0x7b   :  { %p5131_p0 = scmp.ne.s32.totalorder %s5529_s10, %s5130_s29  ;;  %p5134_p1 = scmp.lt.u32.totalorder %s5130_s29, %s5529_s10 }
  0x7d   :  { %p5136_p2 = pnand %p5134_p1, %p5131_p0 }
  0x7f   :  { %5139 = shalt.err (!%p5136_p2)
}
  0x80   :  { %s5140_s6 = scalar_lea.vmem %s106_s1, 4096  ;;  %p5145_p4 = scmp.lt.s32.totalorder %s106_s1, %s106_s1 }
  0x81   :  { %p5141_p3 = scmp.ne.s32.totalorder %s106_s1, %s5140_s6  ;;  %p5146_p5 = scmp.lt.s32.totalorder %s5140_s6, %s5140_s6 }
  0x83   :  { %p5147_p6 = por %p5146_p5, %p5145_p4 }
  0x85   :  { %p5148_p7 = pnand %p5147_p6, %p5141_p3 }
  0x87   :  { %5151 = shalt.err (!%p5148_p7)
}
  0x88   :  { %111 = dma.hbm_to_vmem [thread:$0]  %s5529_s10, 4096, %s106_s1, [#allocation12], %s5217_s30, %s5217_s30, %s5218_s25  }
  0x89   :  { %s5152_s3 = scalar_lea.hbm %s5532_s13, 8192 }
  0x8a   :  { %p5153_p8 = scmp.ne.s32.totalorder %s5532_s13, %s5152_s3  ;;  %p5156_p9 = scmp.lt.u32.totalorder %s5152_s3, %s5532_s13 }
  0x8c   :  { %p5158_p10 = pnand %p5156_p9, %p5153_p8 }
  0x8e   :  { %5161 = shalt.err (!%p5158_p10)
}
  0x8f   :  { %s5162_s19 = scalar_lea.vmem %s132_s28, 8192  ;;  %p5167_p12 = scmp.lt.s32.totalorder %s132_s28, %s132_s28 }
  0x90   :  { %p5163_p11 = scmp.ne.s32.totalorder %s132_s28, %s5162_s19  ;;  %p5168_p13 = scmp.lt.s32.totalorder %s5162_s19, %s5162_s19 }
  0x92   :  { %p5169_p0 = por %p5168_p13, %p5167_p12 }
  0x94   :  { %p5170_p1 = pnand %p5169_p0, %p5163_p11 }
  0x96   :  { %5173 = shalt.err (!%p5170_p1)
}
  0x97   :  { %s5223_s10 = smov 128   ;;  %s5224_s30 = smov 8  }
  0x98   :  { %137 = dma.hbm_to_vmem [thread:$0]  %s5532_s13, 8192, %s132_s28, [#allocation15], %s5223_s10, %s5223_s10, %s5224_s30  }
  0x99   :  { %5196 = dma.done.wait [#allocation3], 64  }
  0x9a   :  { %5197 = vsyncadd [#allocation3], 4294967232 }
  0x9b   :  { %5198 = dma.done.wait [#allocation6], 256  }
  0x9c   :  { %5199 = vsyncadd [#allocation6], 4294967040 }
  0x9d   :  { %5200 = dma.done.wait [#allocation9], 24576  }
  0x9e   :  { %5201 = vsyncadd [#allocation9], 4294942720 }
  0x9f   :  { %5202 = dma.done.wait [#allocation12], 8192  }
  0xa0   :  { %5203 = vsyncadd [#allocation12], 4294959104 }
  0xa1   :  { %5204 = dma.done.wait [#allocation15], 24576  }
  0xa2   :  { %5205 = vsyncadd [#allocation15], 4294942720  ;;  %v5225_v0 = vmov 0   ;;  %v169_v1 = vld [vmem:[#allocation8] sm:$0xff]  ;;  %v170_v14 = vld [vmem:[#allocation8 + $0x8] sm:$0xff] }
  0xa3   :  { %585 = vmatprep.mubr.bf16.mxu0 %v5225_v0  ;;  %626 = vmatprep.mubr.bf16.mxu1 %v5225_v0  ;;  %v173_v2 = vld [vmem:[#allocation8 + $0x20] sm:$0xff]  ;;  %v174_v15 = vld [vmem:[#allocation8 + $0x28] sm:$0xff]  ;;  %v171_v58 = vld [vmem:[#allocation8 + $0x10] sm:$0xff] }
  0xa4   :  { %v177_v3 = vld [vmem:[#allocation8 + $0x40] sm:$0xff]  ;;  %v3871_v4 = vcombine.high %v169_v1, %v173_v2  ;;  %v3870_v5 = vcombine.low %v169_v1, %v173_v2  ;;  %v178_v16 = vld [vmem:[#allocation8 + $0x48] sm:$0xff]  ;;  %v3873_v18 = vcombine.high %v170_v14, %v174_v15  ;;  %v3872_v19 = vcombine.low %v170_v14, %v174_v15  ;;  %v175_v59 = vld [vmem:[#allocation8 + $0x30] sm:$0xff] }
  0xa5   :  { %v181_v6 = vld [vmem:[#allocation8 + $0x60] sm:$0xff]  ;;  %v182_v17 = vld [vmem:[#allocation8 + $0x68] sm:$0xff]  ;;  %v3875_v1 = vcombine.high %v171_v58, %v175_v59  ;;  %v180_v15 = vld [vmem:[#allocation8 + $0x58] sm:$0xff] }
  0xa6   :  { %v3879_v7 = vcombine.high %v177_v3, %v181_v6  ;;  %v185_v8 = vld [vmem:[#allocation8 + $0x80] sm:$0xff]  ;;  %553 = vmatprep.subr.bf16.mxu0 %v3871_v4  ;;  %v3878_v10 = vcombine.low %v177_v3, %v181_v6  ;;  %v3881_v20 = vcombine.high %v178_v16, %v182_v17  ;;  %v186_v22 = vld [vmem:[#allocation8 + $0x88] sm:$0xff]  ;;  %594 = vmatprep.subr.bf16.mxu1 %v3873_v18  ;;  %v179_v4 = vld [vmem:[#allocation8 + $0x50] sm:$0xff] }
  0xa7   :  { %v189_v9 = vld [vmem:[#allocation8 + $0xa0] sm:$0xff]  ;;  %554 = vmatpush1.bf16.msra.mxu0 %v3870_v5  ;;  %v190_v23 = vld [vmem:[#allocation8 + $0xa8] sm:$0xff]  ;;  %595 = vmatpush1.bf16.msra.mxu1 %v3872_v19  ;;  %v3880_v27 = vcombine.low %v178_v16, %v182_v17  ;;  %v183_v5 = vld [vmem:[#allocation8 + $0x70] sm:$0xff] }
  0xa8   :  { %555 = vmatprep.subr.bf16.mxu0 %v3879_v7  ;;  %v3887_v11 = vcombine.high %v185_v8, %v189_v9  ;;  %v193_v12 = vld [vmem:[#allocation8 + $0xc0] sm:$0xff]  ;;  %v3886_v21 = vcombine.low %v185_v8, %v189_v9  ;;  %596 = vmatprep.subr.bf16.mxu1 %v3881_v20  ;;  %v3889_v28 = vcombine.high %v186_v22, %v190_v23  ;;  %v194_v30 = vld [vmem:[#allocation8 + $0xc8] sm:$0xff]  ;;  %v172_v7 = vld [vmem:[#allocation8 + $0x18] sm:$0xff] }
  0xa9   :  { %v197_v13 = vld [vmem:[#allocation8 + $0xe0] sm:$0xff]  ;;  %v198_v31 = vld [vmem:[#allocation8 + $0xe8] sm:$0xff]  ;;  %v3888_v35 = vcombine.low %v186_v22, %v190_v23  ;;  %v3874_v8 = vcombine.low %v171_v58, %v175_v59  ;;  %v176_v9 = vld [vmem:[#allocation8 + $0x38] sm:$0xff]  ;;  %v3882_v16 = vcombine.low %v179_v4, %v183_v5 }
  0xaa   :  { %v3895_v24 = vcombine.high %v193_v12, %v197_v13  ;;  %v201_v25 = vld [vmem:[#allocation8 + $0x100] sm:$0xff]  ;;  %v3894_v29 = vcombine.low %v193_v12, %v197_v13  ;;  %v3897_v36 = vcombine.high %v194_v30, %v198_v31  ;;  %v202_v38 = vld [vmem:[#allocation8 + $0x108] sm:$0xff]  ;;  %v3896_v43 = vcombine.low %v194_v30, %v198_v31  ;;  %v187_v12 = vld [vmem:[#allocation8 + $0x90] sm:$0xff] }
  0xab   :  { %556 = vmatpush1.bf16.msra.mxu0 %v3878_v10  ;;  %v205_v26 = vld [vmem:[#allocation8 + $0x120] sm:$0xff]  ;;  %597 = vmatpush1.bf16.msra.mxu1 %v3880_v27  ;;  %v206_v39 = vld [vmem:[#allocation8 + $0x128] sm:$0xff]  ;;  %v3883_v10 = vcombine.high %v179_v4, %v183_v5  ;;  %v191_v13 = vld [vmem:[#allocation8 + $0xb0] sm:$0xff]  ;;  %v3877_v14 = vcombine.high %v172_v7, %v176_v9  ;;  %v3876_v19 = vcombine.low %v172_v7, %v176_v9 }
  0xac   :  { %557 = vmatprep.subr.bf16.mxu0 %v3887_v11  ;;  %v3903_v32 = vcombine.high %v201_v25, %v205_v26  ;;  %v209_v33 = vld [vmem:[#allocation8 + $0x140] sm:$0xff]  ;;  %598 = vmatprep.subr.bf16.mxu1 %v3889_v28  ;;  %v3902_v37 = vcombine.low %v201_v25, %v205_v26  ;;  %v3905_v44 = vcombine.high %v202_v38, %v206_v39  ;;  %v210_v46 = vld [vmem:[#allocation8 + $0x148] sm:$0xff]  ;;  %v184_v17 = vld [vmem:[#allocation8 + $0x78] sm:$0xff] }
  0xad   :  { %v213_v34 = vld [vmem:[#allocation8 + $0x160] sm:$0xff]  ;;  %v214_v47 = vld [vmem:[#allocation8 + $0x168] sm:$0xff]  ;;  %v3904_v51 = vcombine.low %v202_v38, %v206_v39  ;;  %v3891_v18 = vcombine.high %v187_v12, %v191_v13  ;;  %v195_v20 = vld [vmem:[#allocation8 + $0xd0] sm:$0xff]  ;;  %v3885_v22 = vcombine.high %v180_v15, %v184_v17  ;;  %v3884_v27 = vcombine.low %v180_v15, %v184_v17 }
  0xae   :  { %v3911_v40 = vcombine.high %v209_v33, %v213_v34  ;;  %v217_v41 = vld [vmem:[#allocation8 + $0x180] sm:$0xff]  ;;  %v3910_v45 = vcombine.low %v209_v33, %v213_v34  ;;  %v3913_v52 = vcombine.high %v210_v46, %v214_v47  ;;  %v218_v53 = vld [vmem:[#allocation8 + $0x188] sm:$0xff]  ;;  %v3912_v57 = vcombine.low %v210_v46, %v214_v47  ;;  %v188_v23 = vld [vmem:[#allocation8 + $0x98] sm:$0xff] }
  0xaf   :  { %558 = vmatpush1.bf16.msra.mxu0 %v3886_v21  ;;  %v221_v42 = vld [vmem:[#allocation8 + $0x1a0] sm:$0xff]  ;;  %599 = vmatpush1.bf16.msra.mxu1 %v3888_v35  ;;  %v222_v55 = vld [vmem:[#allocation8 + $0x1a8] sm:$0xff]  ;;  %v199_v21 = vld [vmem:[#allocation8 + $0xf0] sm:$0xff] }
  0xb0   :  { %559 = vmatprep.subr.bf16.mxu0 %v3895_v24  ;;  %600 = vmatprep.subr.bf16.mxu1 %v3897_v36  ;;  %v3919_v48 = vcombine.high %v217_v41, %v221_v42  ;;  %v225_v49 = vld [vmem:[#allocation8 + $0x1c0] sm:$0xff]  ;;  %v3918_v54 = vcombine.low %v217_v41, %v221_v42  ;;  %v3921_v60 = vcombine.high %v218_v53, %v222_v55  ;;  %v226_v61 = vld [vmem:[#allocation8 + $0x1c8] sm:$0xff]  ;;  %v192_v25 = vld [vmem:[#allocation8 + $0xb8] sm:$0xff] }
  0xb1   :  { %v229_v50 = vld [vmem:[#allocation8 + $0x1e0] sm:$0xff]  ;;  %v230_v63 = vld [vmem:[#allocation8 + $0x1e8] sm:$0xff]  ;;  %v3920_v3 = vcombine.low %v218_v53, %v222_v55  ;;  %v3890_v24 = vcombine.low %v187_v12, %v191_v13  ;;  %v3899_v26 = vcombine.high %v195_v20, %v199_v21  ;;  %v203_v28 = vld [vmem:[#allocation8 + $0x110] sm:$0xff]  ;;  %v3893_v30 = vcombine.high %v188_v23, %v192_v25 }
  0xb2   :  { %v3927_v56 = vcombine.high %v225_v49, %v229_v50  ;;  %v3926_v62 = vcombine.low %v225_v49, %v229_v50  ;;  %v5433_v2 = vld [vmem:[#allocation2] sm:$0xf]  ;;  %v3929_v6 = vcombine.high %v226_v61, %v230_v63  ;;  %v3928_v11 = vcombine.low %v226_v61, %v230_v63  ;;  %v196_v31 = vld [vmem:[#allocation8 + $0xd8] sm:$0xff]  ;;  %v211_v36 = vld [vmem:[#allocation8 + $0x150] sm:$0xff] }
  0xb3   :  { %560 = vmatpush1.bf16.msra.mxu0 %v3894_v29  ;;  %601 = vmatpush1.bf16.msra.mxu1 %v3896_v43  ;;  %v207_v29 = vld [vmem:[#allocation8 + $0x130] sm:$0xff]  ;;  %v200_v33 = vld [vmem:[#allocation8 + $0xf8] sm:$0xff]  ;;  %v3892_v35 = vcombine.low %v188_v23, %v192_v25 }
  0xb4   :  { %561 = vmatprep.subr.bf16.mxu0 %v3903_v32  ;;  %602 = vmatprep.subr.bf16.mxu1 %v3905_v44  ;;  %v3898_v32 = vcombine.low %v195_v20, %v199_v21  ;;  %v3907_v34 = vcombine.high %v203_v28, %v207_v29  ;;  %v3901_v38 = vcombine.high %v196_v31, %v200_v33  ;;  %v204_v39 = vld [vmem:[#allocation8 + $0x118] sm:$0xff]  ;;  %v219_v44 = vld [vmem:[#allocation8 + $0x190] sm:$0xff] }
  0xb5   :  { %v208_v41 = vld [vmem:[#allocation8 + $0x138] sm:$0xff]  ;;  %v3900_v43 = vcombine.low %v196_v31, %v200_v33  ;;  %v231_v53 = vld [vmem:[#allocation8 + $0x1f0] sm:$0xff] }
  0xb6   :  { %v3909_v46 = vcombine.high %v204_v39, %v208_v41  ;;  %v212_v47 = vld [vmem:[#allocation8 + $0x158] sm:$0xff]  ;;  %v4408_v63 = vld [vmem:[#allocation10 + $0x4] ss:$16 sps:$4 sm:$0xff]   ;;  %v4406_v4 = vld [vmem:[#allocation10] ss:$16 sps:$4 sm:$0xff]  }
  0xb7   :  { %562 = vmatpush1.bf16.msra.mxu0 %v3902_v37  ;;  %603 = vmatpush1.bf16.msra.mxu1 %v3904_v51  ;;  %v215_v37 = vld [vmem:[#allocation8 + $0x170] sm:$0xff]  ;;  %v216_v49 = vld [vmem:[#allocation8 + $0x178] sm:$0xff]  ;;  %v3908_v51 = vcombine.low %v204_v39, %v208_v41 }
  0xb8   :  { %563 = vmatprep.subr.bf16.mxu0 %v3911_v40  ;;  %604 = vmatprep.subr.bf16.mxu1 %v3913_v52  ;;  %v3906_v40 = vcombine.low %v203_v28, %v207_v29  ;;  %v3915_v42 = vcombine.high %v211_v36, %v215_v37  ;;  %v227_v52 = vld [vmem:[#allocation8 + $0x1d0] sm:$0xff]  ;;  %v220_v55 = vld [vmem:[#allocation8 + $0x198] sm:$0xff]  ;;  %v3916_v59 = vcombine.low %v212_v47, %v216_v49 }
  0xb9   :  { %v3931_v58 = vcombine.high %v227_v52, %v231_v53  ;;  %v232_v61 = vld [vmem:[#allocation8 + $0x1f8] sm:$0xff]  ;;  %v4412_v9 = vld [vmem:[#allocation10 + $0x20] ss:$16 sps:$4 sm:$0xff]   ;;  %v4444_v25 = vld [vmem:[#allocation10 + $0xc4] ss:$16 sps:$4 sm:$0xff]  }
  0xba   :  { %v4411_v7 = vld [vmem:[#allocation10 + $0xc] ss:$16 sps:$4 sm:$0xff]   ;;  %v4418_v13 = vld [vmem:[#allocation10 + $0x40] ss:$16 sps:$4 sm:$0xff]   ;;  %v4415_v15 = vld [vmem:[#allocation10 + $0x28] ss:$16 sps:$4 sm:$0xff]  }
  0xbb   :  { %564 = vmatpush1.bf16.msra.mxu0 %v3910_v45  ;;  %605 = vmatpush1.bf16.msra.mxu1 %v3912_v57  ;;  %v223_v45 = vld [vmem:[#allocation8 + $0x1b0] sm:$0xff]  ;;  %v224_v57 = vld [vmem:[#allocation8 + $0x1b8] sm:$0xff] }
  0xbc   :  { %565 = vmatprep.subr.bf16.mxu0 %v3919_v48  ;;  %606 = vmatprep.subr.bf16.mxu1 %v3921_v60  ;;  %v3914_v48 = vcombine.low %v211_v36, %v215_v37  ;;  %v3923_v50 = vcombine.high %v219_v44, %v223_v45  ;;  %v228_v60 = vld [vmem:[#allocation8 + $0x1d8] sm:$0xff]  ;;  %v4424_v17 = vld [vmem:[#allocation10 + $0x60] ss:$16 sps:$4 sm:$0xff]   ;;  %v4450_v29 = vld [vmem:[#allocation10 + $0xe4] ss:$16 sps:$4 sm:$0xff]  }
  0xbd   :  { %v3933_v5 = vcombine.high %v228_v60, %v232_v61  ;;  %v4417_v12 = vld [vmem:[#allocation10 + $0x2c] ss:$16 sps:$4 sm:$0xff]   ;;  %v4430_v21 = vld [vmem:[#allocation10 + $0x80] ss:$16 sps:$4 sm:$0xff]   ;;  %v4427_v23 = vld [vmem:[#allocation10 + $0x68] ss:$16 sps:$4 sm:$0xff]  }
  0xbe   :  { %v4429_v20 = vld [vmem:[#allocation10 + $0x6c] ss:$16 sps:$4 sm:$0xff]   ;;  %v4442_v28 = vld [vmem:[#allocation10 + $0xc0] ss:$16 sps:$4 sm:$0xff]   ;;  %v4456_v33 = vld [vmem:[#allocation10 + $0x104] ss:$16 sps:$4 sm:$0xff]  }
  0xbf   :  { %566 = vmatpush1.bf16.msra.mxu0 %v3918_v54  ;;  %607 = vmatpush1.bf16.msra.mxu1 %v3920_v3  ;;  %v3917_v54 = vcombine.high %v212_v47, %v216_v49  ;;  %v3924_v3 = vcombine.low %v220_v55, %v224_v57  ;;  %v4447_v31 = vld [vmem:[#allocation10 + $0xcc] ss:$16 sps:$4 sm:$0xff]   ;;  %v4454_v36 = vld [vmem:[#allocation10 + $0x100] ss:$16 sps:$4 sm:$0xff]   ;;  %v4462_v37 = vld [vmem:[#allocation10 + $0x124] ss:$16 sps:$4 sm:$0xff]  }
  0xc0   :  { %567 = vmatprep.subr.bf16.mxu0 %v3927_v56  ;;  %608 = vmatprep.subr.bf16.mxu1 %v3929_v6  ;;  %v3922_v56 = vcombine.low %v219_v44, %v223_v45  ;;  %v4414_v6 = vld [vmem:[#allocation10 + $0x24] ss:$16 sps:$4 sm:$0xff]   ;;  %v4459_v39 = vld [vmem:[#allocation10 + $0x10c] ss:$16 sps:$4 sm:$0xff]   ;;  %v4466_v44 = vld [vmem:[#allocation10 + $0x140] ss:$16 sps:$4 sm:$0xff]  }
  0xc1   :  { %v4468_v41 = vld [vmem:[#allocation10 + $0x144] ss:$16 sps:$4 sm:$0xff]   ;;  %v4471_v47 = vld [vmem:[#allocation10 + $0x14c] ss:$16 sps:$4 sm:$0xff]  }
  0xc2   :  { %v4474_v45 = vld [vmem:[#allocation10 + $0x164] ss:$16 sps:$4 sm:$0xff]  }
  0xc3   :  { %568 = vmatpush1.bf16.msra.mxu0 %v3926_v62  ;;  %609 = vmatpush1.bf16.msra.mxu1 %v3928_v11  ;;  %v3925_v62 = vcombine.high %v220_v55, %v224_v57  ;;  %v4409_v11 = vld [vmem:[#allocation10 + $0x8] ss:$16 sps:$4 sm:$0xff]   ;;  %v4480_v49 = vld [vmem:[#allocation10 + $0x184] ss:$16 sps:$4 sm:$0xff]   ;;  %v4483_v55 = vld [vmem:[#allocation10 + $0x18c] ss:$16 sps:$4 sm:$0xff]  }
  0xc4   :  { %635 = vmatprep.subr.bf16.mxu0 %v3875_v1  ;;  %676 = vmatprep.subr.bf16.mxu1 %v3877_v14  ;;  %v3930_v1 = vcombine.low %v227_v52, %v231_v53  ;;  %v4426_v14 = vld [vmem:[#allocation10 + $0x64] ss:$16 sps:$4 sm:$0xff]   ;;  %v4478_v52 = vld [vmem:[#allocation10 + $0x180] ss:$16 sps:$4 sm:$0xff]  }
  0xc5   :  { %v4486_v53 = vld [vmem:[#allocation10 + $0x1a4] ss:$16 sps:$4 sm:$0xff]   ;;  %v4484_v57 = vld [vmem:[#allocation10 + $0x1a0] ss:$16 sps:$4 sm:$0xff]  }
  0xc6   :  { %586 = vmatmul.mubr.bf16.vlgmr.msra.gmra.mrb[0].mxu0 %v5433_v2  ;;  %627 = vmatmul.mubr.bf16.vlgmr.msra.gmra.mrb[0].mxu1 %v5433_v2 }
  0xc7   :  { %636 = vmatpush1.bf16.msra.mxu0 %v3874_v8  ;;  %667 = vmatprep.mubr.bf16.mxu0 %v5225_v0  ;;  %v3932_v8 = vcombine.low %v228_v60, %v232_v61  ;;  %v4487_v60 = vld [vmem:[#allocation10 + $0x1a8] ss:$16 sps:$4 sm:$0xff]   ;;  %v4490_v61 = vld [vmem:[#allocation10 + $0x1c0] ss:$16 sps:$4 sm:$0xff]  }
  0xc8   :  { %637 = vmatprep.subr.bf16.mxu0 %v3883_v10  ;;  %677 = vmatpush1.bf16.msra.mxu1 %v3876_v19  ;;  %v4420_v10 = vld [vmem:[#allocation10 + $0x44] ss:$16 sps:$4 sm:$0xff]   ;;  %v4421_v19 = vld [vmem:[#allocation10 + $0x48] ss:$16 sps:$4 sm:$0xff]  }
  0xc9   :  { %708 = vmatprep.mubr.bf16.mxu1 %v5225_v0  ;;  %678 = vmatprep.subr.bf16.mxu1 %v3885_v22  ;;  %v4438_v22 = vld [vmem:[#allocation10 + $0xa4] ss:$16 sps:$4 sm:$0xff]  }
  0xcb   :  { %638 = vmatpush1.bf16.msra.mxu0 %v3882_v16  ;;  %v4423_v16 = vld [vmem:[#allocation10 + $0x4c] ss:$16 sps:$4 sm:$0xff]  }
  0xcc   :  { %639 = vmatprep.subr.bf16.mxu0 %v3891_v18  ;;  %679 = vmatpush1.bf16.msra.mxu1 %v3884_v27  ;;  %v4432_v18 = vld [vmem:[#allocation10 + $0x84] ss:$16 sps:$4 sm:$0xff]   ;;  %v4441_v27 = vld [vmem:[#allocation10 + $0xac] ss:$16 sps:$4 sm:$0xff]  }
  0xcd   :  { %680 = vmatprep.subr.bf16.mxu1 %v3893_v30  ;;  %v4439_v30 = vld [vmem:[#allocation10 + $0xa8] ss:$16 sps:$4 sm:$0xff]  }
  0xcf   :  { %640 = vmatpush1.bf16.msra.mxu0 %v3890_v24  ;;  %v4435_v24 = vld [vmem:[#allocation10 + $0x8c] ss:$16 sps:$4 sm:$0xff]  }
  0xd0   :  { %641 = vmatprep.subr.bf16.mxu0 %v3899_v26  ;;  %681 = vmatpush1.bf16.msra.mxu1 %v3892_v35  ;;  %v4433_v26 = vld [vmem:[#allocation10 + $0x88] ss:$16 sps:$4 sm:$0xff]   ;;  %v4453_v35 = vld [vmem:[#allocation10 + $0xec] ss:$16 sps:$4 sm:$0xff]  }
  0xd1   :  { %682 = vmatprep.subr.bf16.mxu1 %v3901_v38  ;;  %v4451_v38 = vld [vmem:[#allocation10 + $0xe8] ss:$16 sps:$4 sm:$0xff]  }
  0xd3   :  { %642 = vmatpush1.bf16.msra.mxu0 %v3898_v32  ;;  %v4448_v32 = vld [vmem:[#allocation10 + $0xe0] ss:$16 sps:$4 sm:$0xff]  }
  0xd4   :  { %643 = vmatprep.subr.bf16.mxu0 %v3907_v34  ;;  %683 = vmatpush1.bf16.msra.mxu1 %v3900_v43  ;;  %v4445_v34 = vld [vmem:[#allocation10 + $0xc8] ss:$16 sps:$4 sm:$0xff]   ;;  %v4465_v43 = vld [vmem:[#allocation10 + $0x12c] ss:$16 sps:$4 sm:$0xff]  }
  0xd5   :  { %684 = vmatprep.subr.bf16.mxu1 %v3909_v46  ;;  %v4463_v46 = vld [vmem:[#allocation10 + $0x128] ss:$16 sps:$4 sm:$0xff]  }
  0xd7   :  { %644 = vmatpush1.bf16.msra.mxu0 %v3906_v40  ;;  %v4460_v40 = vld [vmem:[#allocation10 + $0x120] ss:$16 sps:$4 sm:$0xff]  }
  0xd8   :  { %645 = vmatprep.subr.bf16.mxu0 %v3915_v42  ;;  %685 = vmatpush1.bf16.msra.mxu1 %v3908_v51  ;;  %v4457_v42 = vld [vmem:[#allocation10 + $0x108] ss:$16 sps:$4 sm:$0xff]   ;;  %v4477_v51 = vld [vmem:[#allocation10 + $0x16c] ss:$16 sps:$4 sm:$0xff]  }
  0xd9   :  { %686 = vmatprep.subr.bf16.mxu1 %v3917_v54  ;;  %v4475_v54 = vld [vmem:[#allocation10 + $0x168] ss:$16 sps:$4 sm:$0xff]  }
  0xdb   :  { %646 = vmatpush1.bf16.msra.mxu0 %v3914_v48  ;;  %v4472_v48 = vld [vmem:[#allocation10 + $0x160] ss:$16 sps:$4 sm:$0xff]  }
  0xdc   :  { %647 = vmatprep.subr.bf16.mxu0 %v3923_v50  ;;  %687 = vmatpush1.bf16.msra.mxu1 %v3916_v59  ;;  %v4469_v50 = vld [vmem:[#allocation10 + $0x148] ss:$16 sps:$4 sm:$0xff]   ;;  %v4492_v59 = vld [vmem:[#allocation10 + $0x1c4] ss:$16 sps:$4 sm:$0xff]  }
  0xdd   :  { %688 = vmatprep.subr.bf16.mxu1 %v3925_v62  ;;  %v4495_v62 = vld [vmem:[#allocation10 + $0x1cc] ss:$16 sps:$4 sm:$0xff]  }
  0xdf   :  { %648 = vmatpush1.bf16.msra.mxu0 %v3922_v56  ;;  %v4481_v56 = vld [vmem:[#allocation10 + $0x188] ss:$16 sps:$4 sm:$0xff]  }
  0xe0   :  { %649 = vmatprep.subr.bf16.mxu0 %v3931_v58  ;;  %689 = vmatpush1.bf16.msra.mxu1 %v3924_v3  ;;  %v4489_v58 = vld [vmem:[#allocation10 + $0x1ac] ss:$16 sps:$4 sm:$0xff]   ;;  %v4496_v3 = vld [vmem:[#allocation10 + $0x1e0] ss:$16 sps:$4 sm:$0xff]  }
  0xe1   :  { %690 = vmatprep.subr.bf16.mxu1 %v3933_v5  ;;  %v4504_v5 = vld [vmem:[#allocation10 + $0x204] ss:$16 sps:$4 sm:$0xff]  }
  0xe3   :  { %650 = vmatpush1.bf16.msra.mxu0 %v3930_v1  ;;  %v4493_v1 = vld [vmem:[#allocation10 + $0x1c8] ss:$16 sps:$4 sm:$0xff]  }
  0xe4   :  { %1541 = vmatprep.subr.bf16.mxu0 %v4408_v63  ;;  %691 = vmatpush1.bf16.msra.mxu1 %v3932_v8  ;;  %v4498_v63 = vld [vmem:[#allocation10 + $0x1e4] ss:$16 sps:$4 sm:$0xff]   ;;  %v719_v8 = vlaneseq }
  0xe5   :  { %1623 = vmatprep.subr.bf16.mxu1 %v4411_v7  ;;  %v4507_v7 = vld [vmem:[#allocation10 + $0x20c] ss:$16 sps:$4 sm:$0xff]  }
  0xe6   :  { %668 = vmatmul.mubr.bf16.vlgmr.msra.gmra.mrb[4].mxu0 %v5433_v2 }
  0xe7   :  { %1542 = vmatpush1.bf16.msra.mxu0 %v4406_v4  ;;  %709 = vmatmul.mubr.bf16.vlgmr.msra.gmra.mrb[4].mxu1 %v5433_v2  ;;  %v4436_v2 = vld [vmem:[#allocation10 + $0xa0] ss:$16 sps:$4 sm:$0xff]   ;;  %v4501_v4 = vld [vmem:[#allocation10 + $0x1ec] ss:$16 sps:$4 sm:$0xff]  }
  0xe8   :  { %1543 = vmatprep.subr.bf16.mxu0 %v4414_v6  ;;  %1624 = vmatpush1.bf16.msra.mxu1 %v4409_v11  ;;  %v4499_v6 = vld [vmem:[#allocation10 + $0x1e8] ss:$16 sps:$4 sm:$0xff]   ;;  %v717_v11 = vld [vmem:[%s5523_s4] sm:$0xf] }
  0xe9   :  { %1625 = vmatprep.subr.bf16.mxu1 %v4417_v12 }
  0xeb   :  { %1544 = vmatpush1.bf16.msra.mxu0 %v4412_v9  ;;  %v720_v9 = vshrl.u32 %v719_v8, 7 }
  0xec   :  { %1545 = vmatprep.subr.bf16.mxu0 %v4420_v10  ;;  %1626 = vmatpush1.bf16.msra.mxu1 %v4415_v15 }
  0xed   :  { %1627 = vmatprep.subr.bf16.mxu1 %v4423_v16  ;;  %v5442_v10 = vsub.s32 0, %v720_v9  ;;  %v5447_v12 = vsub.s32 1, %v720_v9  ;;  %v5451_v15 = vsub.s32 2, %v720_v9 }
  0xef   :  { %1546 = vmatpush1.bf16.msra.mxu0 %v4418_v13  ;;  %v722_v13 = vrot.slane %v717_v11, %v5442_v10 }
  0xf0   :  { %1547 = vmatprep.subr.bf16.mxu0 %v4426_v14  ;;  %1628 = vmatpush1.bf16.msra.mxu1 %v4421_v19  ;;  %v726_v14 = vrot.slane %v717_v11, %v5447_v12 }
  0xf1   :  { %1629 = vmatprep.subr.bf16.mxu1 %v4429_v20 }
  0xf3   :  { %1548 = vmatpush1.bf16.msra.mxu0 %v4424_v17  ;;  %v5453_v17 = vsub.s32 3, %v720_v9  ;;  %v4555_v9 = vld [vmem:[#allocation10 + $0x30c] ss:$16 sps:$4 sm:$0xff]  }
  0xf4   :  { %1549 = vmatprep.subr.bf16.mxu0 %v4432_v18  ;;  %1630 = vmatpush1.bf16.msra.mxu1 %v4427_v23 }
  0xf5   :  { %1631 = vmatprep.subr.bf16.mxu1 %v4435_v24  ;;  %v730_v24 = vrot.slane %v717_v11, %v5451_v15 }
  0xf7   :  { %1550 = vmatpush1.bf16.msra.mxu0 %v4430_v21 }
  0xf8   :  { %1551 = vmatprep.subr.bf16.mxu0 %v4438_v22  ;;  %1632 = vmatpush1.bf16.msra.mxu1 %v4433_v26 }
  0xf9   :  { %1633 = vmatprep.subr.bf16.mxu1 %v4441_v27  ;;  %v4502_v27 = vld [vmem:[#allocation10 + $0x200] ss:$16 sps:$4 sm:$0xff]  }
  0xfb   :  { %1552 = vmatpush1.bf16.msra.mxu0 %v4436_v2 }
  0xfc   :  { %1553 = vmatprep.subr.bf16.mxu0 %v4444_v25  ;;  %1634 = vmatpush1.bf16.msra.mxu1 %v4439_v30  ;;  %v734_v25 = vrot.slane %v717_v11, %v5453_v17 }
  0xfd   :  { %1635 = vmatprep.subr.bf16.mxu1 %v4447_v31  ;;  %v4510_v31 = vld [vmem:[#allocation10 + $0x224] ss:$16 sps:$4 sm:$0xff]  }
  0xff   :  { %1554 = vmatpush1.bf16.msra.mxu0 %v4442_v28  ;;  %v4505_v28 = vld [vmem:[#allocation10 + $0x208] ss:$16 sps:$4 sm:$0xff]  }
 0x100   :  { %1555 = vmatprep.subr.bf16.mxu0 %v4450_v29  ;;  %1636 = vmatpush1.bf16.msra.mxu1 %v4445_v34 }
 0x101   :  { %1637 = vmatprep.subr.bf16.mxu1 %v4453_v35 }
 0x103   :  { %1556 = vmatpush1.bf16.msra.mxu0 %v4448_v32  ;;  %v4513_v32 = vld [vmem:[#allocation10 + $0x22c] ss:$16 sps:$4 sm:$0xff]  }
 0x104   :  { %1557 = vmatprep.subr.bf16.mxu0 %v4456_v33  ;;  %1638 = vmatpush1.bf16.msra.mxu1 %v4451_v38  ;;  %v4508_v38 = vld [vmem:[#allocation10 + $0x220] ss:$16 sps:$4 sm:$0xff]  }
 0x105   :  { %1639 = vmatprep.subr.bf16.mxu1 %v4459_v39  ;;  %v4511_v39 = vld [vmem:[#allocation10 + $0x228] ss:$16 sps:$4 sm:$0xff]  }
 0x107   :  { %1558 = vmatpush1.bf16.msra.mxu0 %v4454_v36 }
 0x108   :  { %1559 = vmatprep.subr.bf16.mxu0 %v4462_v37  ;;  %1640 = vmatpush1.bf16.msra.mxu1 %v4457_v42  ;;  %v4519_v42 = vld [vmem:[#allocation10 + $0x24c] ss:$16 sps:$4 sm:$0xff]  }
 0x109   :  { %1641 = vmatprep.subr.bf16.mxu1 %v4465_v43 }
 0x10b   :  { %1560 = vmatpush1.bf16.msra.mxu0 %v4460_v40 }
 0x10c   :  { %1561 = vmatprep.subr.bf16.mxu0 %v4468_v41  ;;  %1642 = vmatpush1.bf16.msra.mxu1 %v4463_v46  ;;  %v4516_v41 = vld [vmem:[#allocation10 + $0x244] ss:$16 sps:$4 sm:$0xff]  }
 0x10d   :  { %1643 = vmatprep.subr.bf16.mxu1 %v4471_v47  ;;  %v4522_v46 = vld [vmem:[#allocation10 + $0x264] ss:$16 sps:$4 sm:$0xff]   ;;  %v4525_v47 = vld [vmem:[#allocation10 + $0x26c] ss:$16 sps:$4 sm:$0xff]  }
 0x10f   :  { %1562 = vmatpush1.bf16.msra.mxu0 %v4466_v44  ;;  %v4514_v44 = vld [vmem:[#allocation10 + $0x240] ss:$16 sps:$4 sm:$0xff]  }
 0x110   :  { %1563 = vmatprep.subr.bf16.mxu0 %v4474_v45  ;;  %1644 = vmatpush1.bf16.msra.mxu1 %v4469_v50  ;;  %v4517_v45 = vld [vmem:[#allocation10 + $0x248] ss:$16 sps:$4 sm:$0xff]   ;;  %v4528_v50 = vld [vmem:[#allocation10 + $0x284] ss:$16 sps:$4 sm:$0xff]  }
 0x111   :  { %1645 = vmatprep.subr.bf16.mxu1 %v4477_v51  ;;  %v4531_v51 = vld [vmem:[#allocation10 + $0x28c] ss:$16 sps:$4 sm:$0xff]  }
 0x113   :  { %1564 = vmatpush1.bf16.msra.mxu0 %v4472_v48  ;;  %v4520_v48 = vld [vmem:[#allocation10 + $0x260] ss:$16 sps:$4 sm:$0xff]  }
 0x114   :  { %1565 = vmatprep.subr.bf16.mxu0 %v4480_v49  ;;  %1646 = vmatpush1.bf16.msra.mxu1 %v4475_v54  ;;  %v4523_v49 = vld [vmem:[#allocation10 + $0x268] ss:$16 sps:$4 sm:$0xff]   ;;  %v4534_v54 = vld [vmem:[#allocation10 + $0x2a4] ss:$16 sps:$4 sm:$0xff]  }
 0x115   :  { %1647 = vmatprep.subr.bf16.mxu1 %v4483_v55  ;;  %v4537_v55 = vld [vmem:[#allocation10 + $0x2ac] ss:$16 sps:$4 sm:$0xff]  }
 0x117   :  { %1566 = vmatpush1.bf16.msra.mxu0 %v4478_v52  ;;  %v4526_v52 = vld [vmem:[#allocation10 + $0x280] ss:$16 sps:$4 sm:$0xff]  }
 0x118   :  { %1567 = vmatprep.subr.bf16.mxu0 %v4486_v53  ;;  %1648 = vmatpush1.bf16.msra.mxu1 %v4481_v56  ;;  %v4529_v53 = vld [vmem:[#allocation10 + $0x288] ss:$16 sps:$4 sm:$0xff]   ;;  %v4532_v56 = vld [vmem:[#allocation10 + $0x2a0] ss:$16 sps:$4 sm:$0xff]  }
 0x119   :  { %1649 = vmatprep.subr.bf16.mxu1 %v4489_v58  ;;  %v4540_v58 = vld [vmem:[#allocation10 + $0x2c4] ss:$16 sps:$4 sm:$0xff]  }
 0x11b   :  { %1568 = vmatpush1.bf16.msra.mxu0 %v4484_v57  ;;  %v4535_v57 = vld [vmem:[#allocation10 + $0x2a8] ss:$16 sps:$4 sm:$0xff]  }
 0x11c   :  { %1569 = vmatprep.subr.bf16.mxu0 %v4492_v59  ;;  %1650 = vmatpush1.bf16.msra.mxu1 %v4487_v60  ;;  %v4543_v59 = vld [vmem:[#allocation10 + $0x2cc] ss:$16 sps:$4 sm:$0xff]   ;;  %v4538_v60 = vld [vmem:[#allocation10 + $0x2c0] ss:$16 sps:$4 sm:$0xff]  }
 0x11d   :  { %1651 = vmatprep.subr.bf16.mxu1 %v4495_v62  ;;  %v4546_v62 = vld [vmem:[#allocation10 + $0x2e4] ss:$16 sps:$4 sm:$0xff]  }
 0x11f   :  { %1570 = vmatpush1.bf16.msra.mxu0 %v4490_v61  ;;  %v4541_v61 = vld [vmem:[#allocation10 + $0x2c8] ss:$16 sps:$4 sm:$0xff]  }
 0x120   :  { %1571 = vmatprep.subr.bf16.mxu0 %v4498_v63  ;;  %1652 = vmatpush1.bf16.msra.mxu1 %v4493_v1  ;;  %v4549_v63 = vld [vmem:[#allocation10 + $0x2ec] ss:$16 sps:$4 sm:$0xff]  }
 0x121   :  { %1653 = vmatprep.subr.bf16.mxu1 %v4501_v4  ;;  %v4544_v4 = vld [vmem:[#allocation10 + $0x2e0] ss:$16 sps:$4 sm:$0xff]  }
 0x123   :  { %1572 = vmatpush1.bf16.msra.mxu0 %v4496_v3 }
 0x124   :  { %1582 = vmatprep.subr.bf16.mxu0 %v4504_v5  ;;  %1654 = vmatpush1.bf16.msra.mxu1 %v4499_v6  ;;  %v4547_v5 = vld [vmem:[#allocation10 + $0x2e8] ss:$16 sps:$4 sm:$0xff]  }
 0x125   :  { %1664 = vmatprep.subr.bf16.mxu1 %v4507_v7  ;;  %v4552_v7 = vld [vmem:[#allocation10 + $0x304] ss:$16 sps:$4 sm:$0xff]  }
 0x199   :  { %v587_v16 = vpop.f32.mrb[0].mxu0  ;;  %v628_v29 = vpop.f32.mrb[0].mxu1 }
 0x19a   :  { %v739_v18 = vadd.f32 %v722_v13, %v587_v16  ;;  %v589_v19 = vpop.f32.mrb[1].mxu0  ;;  %v5457_v33 = vadd.f32 %v730_v24, %v628_v29  ;;  %v630_v34 = vpop.f32.mrb[1].mxu1  ;;  %v4550_v13 = vld [vmem:[#allocation10 + $0x300] ss:$16 sps:$4 sm:$0xff]   ;;  %v4559_v24 = vld [vmem:[#allocation10 + $0x328] ss:$16 sps:$4 sm:$0xff]  }
 0x19b   :  { %v740_v20 = vadd.f32 %v726_v14, %v589_v19  ;;  %v591_v21 = vpop.f32.mrb[2].mxu0  ;;  %v742_v35 = vadd.f32 %v734_v25, %v630_v34  ;;  %v632_v36 = vpop.f32.mrb[2].mxu1  ;;  %v4553_v14 = vld [vmem:[#allocation10 + $0x308] ss:$16 sps:$4 sm:$0xff]   ;;  %v4561_v19 = vld [vmem:[#allocation10 + $0x32c] ss:$16 sps:$4 sm:$0xff]  }
 0x19c   :  { %v743_v22 = vmax.f32 %v739_v18, 0.0  ;;  %v592_v23 = vpop.f32.mrb[3].mxu0  ;;  %v633_v37 = vpop.f32.mrb[3].mxu1  ;;  %v4558_v18 = vld [vmem:[#allocation10 + $0x324] ss:$16 sps:$4 sm:$0xff]  }
 0x19d   :  { %v744_v2 = vmax.f32 %v740_v20, 0.0  ;;  %v746_v40 = vmax.f32 %v742_v35, 0.0  ;;  %v4556_v23 = vld [vmem:[#allocation10 + $0x320] ss:$16 sps:$4 sm:$0xff]   ;;  %v4567_v25 = vld [vmem:[#allocation10 + $0x34c] ss:$16 sps:$4 sm:$0xff]  }
 0x19e   :  { %v747_v30 = vpack.c.bf16 %v743_v22, %v743_v22  ;;  %v4573_v29 = vld [vmem:[#allocation10 + $0x36c] ss:$16 sps:$4 sm:$0xff]   ;;  %v4574_v35 = vld [vmem:[#allocation10 + $0x380] ss:$16 sps:$4 sm:$0xff]   ;;  %v4577_v36 = vld [vmem:[#allocation10 + $0x388] ss:$16 sps:$4 sm:$0xff]  }
 0x19f   :  { %v748_v26 = vpack.c.bf16 %v744_v2, %v744_v2  ;;  %v750_v43 = vpack.c.bf16 %v746_v40, %v746_v40  ;;  %v4564_v2 = vld [vmem:[#allocation10 + $0x344] ss:$16 sps:$4 sm:$0xff]   ;;  %v4579_v34 = vld [vmem:[#allocation10 + $0x38c] ss:$16 sps:$4 sm:$0xff]   ;;  %v4583_v40 = vld [vmem:[#allocation10 + $0x3a8] ss:$16 sps:$4 sm:$0xff]  }
 0x1a0   :  { %v4582_v37 = vld [vmem:[#allocation10 + $0x3a4] ss:$16 sps:$4 sm:$0xff]  }
 0x1a1   :  { %1573 = vmatprep.mubr.bf16.mxu0 %v748_v26  ;;  %1655 = vmatprep.mubr.bf16.mxu1 %v748_v26  ;;  %v4562_v26 = vld [vmem:[#allocation10 + $0x340] ss:$16 sps:$4 sm:$0xff]  }
 0x1a2   :  { %1574 = vmatmul.mubr.bf16.vlgmr.msra.gmra.mrb[8].mxu0 %v747_v30  ;;  %1656 = vmatmul.mubr.bf16.vlgmr.msra.gmra.mrb[8].mxu1 %v747_v30  ;;  %v4568_v30 = vld [vmem:[#allocation10 + $0x360] ss:$16 sps:$4 sm:$0xff]  }
 0x1a3   :  { %1583 = vmatpush1.bf16.msra.mxu0 %v4502_v27  ;;  %1665 = vmatpush1.bf16.msra.mxu1 %v4505_v28  ;;  %v4565_v27 = vld [vmem:[#allocation10 + $0x348] ss:$16 sps:$4 sm:$0xff]   ;;  %v4570_v28 = vld [vmem:[#allocation10 + $0x364] ss:$16 sps:$4 sm:$0xff]  }
 0x1a4   :  { %1584 = vmatprep.subr.bf16.mxu0 %v4510_v31  ;;  %1666 = vmatprep.subr.bf16.mxu1 %v4513_v32  ;;  %v4571_v31 = vld [vmem:[#allocation10 + $0x368] ss:$16 sps:$4 sm:$0xff]   ;;  %v4576_v32 = vld [vmem:[#allocation10 + $0x384] ss:$16 sps:$4 sm:$0xff]  }
 0x1a5   :  { %1614 = vmatprep.mubr.bf16.mxu0 %v750_v43  ;;  %1696 = vmatprep.mubr.bf16.mxu1 %v750_v43  ;;  %v4586_v43 = vld [vmem:[#allocation10 + $0x3c0] ss:$16 sps:$4 sm:$0xff]  }
 0x1a7   :  { %1585 = vmatpush1.bf16.msra.mxu0 %v4508_v38  ;;  %1667 = vmatpush1.bf16.msra.mxu1 %v4511_v39  ;;  %v4585_v38 = vld [vmem:[#allocation10 + $0x3ac] ss:$16 sps:$4 sm:$0xff]   ;;  %v4580_v39 = vld [vmem:[#allocation10 + $0x3a0] ss:$16 sps:$4 sm:$0xff]  }
 0x1a8   :  { %1586 = vmatprep.subr.bf16.mxu0 %v4516_v41  ;;  %1668 = vmatprep.subr.bf16.mxu1 %v4519_v42  ;;  %v4588_v41 = vld [vmem:[#allocation10 + $0x3c4] ss:$16 sps:$4 sm:$0xff]   ;;  %v4591_v42 = vld [vmem:[#allocation10 + $0x3cc] ss:$16 sps:$4 sm:$0xff]  }
 0x1ab   :  { %1587 = vmatpush1.bf16.msra.mxu0 %v4514_v44  ;;  %1669 = vmatpush1.bf16.msra.mxu1 %v4517_v45  ;;  %v4589_v44 = vld [vmem:[#allocation10 + $0x3c8] ss:$16 sps:$4 sm:$0xff]   ;;  %v4594_v45 = vld [vmem:[#allocation10 + $0x3e4] ss:$16 sps:$4 sm:$0xff]  }
 0x1ac   :  { %1588 = vmatprep.subr.bf16.mxu0 %v4522_v46  ;;  %1670 = vmatprep.subr.bf16.mxu1 %v4525_v47  ;;  %v4597_v46 = vld [vmem:[#allocation10 + $0x3ec] ss:$16 sps:$4 sm:$0xff]   ;;  %v4592_v47 = vld [vmem:[#allocation10 + $0x3e0] ss:$16 sps:$4 sm:$0xff]  }
 0x1af   :  { %1589 = vmatpush1.bf16.msra.mxu0 %v4520_v48  ;;  %1671 = vmatpush1.bf16.msra.mxu1 %v4523_v49  ;;  %v4595_v48 = vld [vmem:[#allocation10 + $0x3e8] ss:$16 sps:$4 sm:$0xff]   ;;  %v745_v49 = vmax.f32 %v5457_v33, 0.0  ;;  %v4606_v33 = vld [vmem:[#allocation11 + $0x50] sm:$0xff]  }
 0x1b0   :  { %1590 = vmatprep.subr.bf16.mxu0 %v4528_v50  ;;  %1672 = vmatprep.subr.bf16.mxu1 %v4531_v51  ;;  %v4598_v50 = vld [vmem:[#allocation11 + $0x40] sm:$0xff]  }
 0x1b1   :  { %v4599_v51 = vld [vmem:[#allocation11 + $0xc0] sm:$0xff]  }
 0x1b3   :  { %1591 = vmatpush1.bf16.msra.mxu0 %v4526_v52  ;;  %1673 = vmatpush1.bf16.msra.mxu1 %v4529_v53  ;;  %v4600_v52 = vld [vmem:[#allocation11] sm:$0xff]  }
 0x1b4   :  { %1592 = vmatprep.subr.bf16.mxu0 %v4534_v54  ;;  %1674 = vmatprep.subr.bf16.mxu1 %v4537_v55  ;;  %v4601_v53 = vld [vmem:[#allocation11 + $0x80] sm:$0xff]   ;;  %v749_v54 = vpack.c.bf16 %v745_v49, %v745_v49  ;;  %v4602_v55 = vld [vmem:[#allocation11 + $0x48] sm:$0xff]  }
 0x1b7   :  { %1593 = vmatpush1.bf16.msra.mxu0 %v4532_v56  ;;  %1675 = vmatpush1.bf16.msra.mxu1 %v4535_v57  ;;  %v4603_v56 = vld [vmem:[#allocation11 + $0xc8] sm:$0xff]  }
 0x1b8   :  { %1594 = vmatprep.subr.bf16.mxu0 %v4540_v58  ;;  %1676 = vmatprep.subr.bf16.mxu1 %v4543_v59  ;;  %v4604_v57 = vld [vmem:[#allocation11 + $0x8] sm:$0xff]   ;;  %v4607_v59 = vld [vmem:[#allocation11 + $0xd0] sm:$0xff]  }
 0x1b9   :  { %v5459_v1 = vpop.f32.mrb[4].mxu0  ;;  %v4605_v58 = vld [vmem:[#allocation11 + $0x88] sm:$0xff]  }
 0x1ba   :  { %v5461_v3 = vpop.f32.mrb[5].mxu0  ;;  %v5463_v16 = vpop.f32.mrb[4].mxu1 }
 0x1bb   :  { %1595 = vmatpush1.bf16.msra.mxu0 %v4538_v60  ;;  %1677 = vmatpush1.bf16.msra.mxu1 %v4541_v61  ;;  %v673_v6 = vpop.f32.mrb[6].mxu0  ;;  %v5465_v20 = vpop.f32.mrb[5].mxu1  ;;  %v4608_v60 = vld [vmem:[#allocation11 + $0x10] sm:$0xff]  }
 0x1bc   :  { %1596 = vmatprep.subr.bf16.mxu0 %v4546_v62  ;;  %1678 = vmatprep.subr.bf16.mxu1 %v4549_v63  ;;  %v674_v11 = vpop.f32.mrb[7].mxu0  ;;  %v714_v21 = vpop.f32.mrb[6].mxu1  ;;  %v4609_v61 = vld [vmem:[#allocation11 + $0x90] sm:$0xff]   ;;  %v4610_v62 = vld [vmem:[#allocation11 + $0x58] sm:$0xff]   ;;  %v4614_v6 = vld [vmem:[#allocation11 + $0x60] sm:$0xff]  }
 0x1bd   :  { %v715_v22 = vpop.f32.mrb[7].mxu1  ;;  %v4611_v63 = vld [vmem:[#allocation11 + $0xd8] sm:$0xff]   ;;  %v4617_v11 = vld [vmem:[#allocation11 + $0xa0] sm:$0xff]   ;;  %v4622_v21 = vld [vmem:[#allocation11 + $0x70] sm:$0xff]  }
 0x1be   :  { %v4623_v22 = vld [vmem:[#allocation11 + $0xf0] sm:$0xff]  }
 0x1bf   :  { %1597 = vmatpush1.bf16.msra.mxu0 %v4544_v4  ;;  %1679 = vmatpush1.bf16.msra.mxu1 %v4547_v5  ;;  %v4612_v4 = vld [vmem:[#allocation11 + $0x18] sm:$0xff]  }
 0x1c0   :  { %1598 = vmatprep.subr.bf16.mxu0 %v4552_v7  ;;  %1680 = vmatprep.subr.bf16.mxu1 %v4555_v9  ;;  %v4613_v5 = vld [vmem:[#allocation11 + $0x98] sm:$0xff]   ;;  %v4615_v7 = vld [vmem:[#allocation11 + $0xe0] sm:$0xff]  }
 0x1c1   :  { %v4616_v9 = vld [vmem:[#allocation11 + $0x20] sm:$0xff]  }
 0x1c3   :  { %1599 = vmatpush1.bf16.msra.mxu0 %v4550_v13  ;;  %1681 = vmatpush1.bf16.msra.mxu1 %v4553_v14  ;;  %v4618_v13 = vld [vmem:[#allocation11 + $0x68] sm:$0xff]  }
 0x1c4   :  { %1600 = vmatprep.subr.bf16.mxu0 %v4558_v18  ;;  %1682 = vmatprep.subr.bf16.mxu1 %v4561_v19  ;;  %v4619_v14 = vld [vmem:[#allocation11 + $0xe8] sm:$0xff]  }
 0x1c5   :  { %v4620_v18 = vld [vmem:[#allocation11 + $0x28] sm:$0xff]  }
 0x1c6   :  { %v4621_v19 = vld [vmem:[#allocation11 + $0xa8] sm:$0xff]  }
 0x1c7   :  { %1601 = vmatpush1.bf16.msra.mxu0 %v4556_v23  ;;  %1683 = vmatpush1.bf16.msra.mxu1 %v4559_v24  ;;  %v4624_v23 = vld [vmem:[#allocation11 + $0x30] sm:$0xff]  }
 0x1c8   :  { %1602 = vmatprep.subr.bf16.mxu0 %v4564_v2  ;;  %1684 = vmatprep.subr.bf16.mxu1 %v4567_v25  ;;  %v4625_v24 = vld [vmem:[#allocation11 + $0xb0] sm:$0xff]   ;;  %v4626_v2 = vld [vmem:[#allocation11 + $0x78] sm:$0xff]  }
 0x1c9   :  { %v4627_v25 = vld [vmem:[#allocation11 + $0xf8] sm:$0xff]  }
 0x1cb   :  { %1603 = vmatpush1.bf16.msra.mxu0 %v4562_v26  ;;  %1685 = vmatpush1.bf16.msra.mxu1 %v4565_v27  ;;  %v4628_v26 = vld [vmem:[#allocation11 + $0x38] sm:$0xff]  }
 0x1cc   :  { %1604 = vmatprep.subr.bf16.mxu0 %v4570_v28  ;;  %1686 = vmatprep.subr.bf16.mxu1 %v4573_v29  ;;  %v4629_v27 = vld [vmem:[#allocation11 + $0xb8] sm:$0xff]   ;;  %v879_v28 = vld [vmem:[%s5526_s7] sm:$0xf] }
 0x1cd   :  { %v884_v29 = vrot.slane %v879_v28, %v5442_v10 }
 0x1cf   :  { %1605 = vmatpush1.bf16.msra.mxu0 %v4568_v30  ;;  %1687 = vmatpush1.bf16.msra.mxu1 %v4571_v31  ;;  %v892_v30 = vrot.slane %v879_v28, %v5451_v15  ;;  %v888_v31 = vrot.slane %v879_v28, %v5447_v12 }
 0x1d0   :  { %1606 = vmatprep.subr.bf16.mxu0 %v4576_v32  ;;  %1688 = vmatprep.subr.bf16.mxu1 %v4579_v34  ;;  %v896_v32 = vrot.slane %v879_v28, %v5453_v17  ;;  %v4648_v28 = vld [vmem:[#allocation13 + $0x60] ss:$16 sps:$4 sm:$0xff]  }
 0x1d3   :  { %1607 = vmatpush1.bf16.msra.mxu0 %v4574_v35  ;;  %1689 = vmatpush1.bf16.msra.mxu1 %v4577_v36 }
 0x1d4   :  { %1608 = vmatprep.subr.bf16.mxu0 %v4582_v37  ;;  %1690 = vmatprep.subr.bf16.mxu1 %v4585_v38 }
 0x1d7   :  { %1609 = vmatpush1.bf16.msra.mxu0 %v4580_v39  ;;  %1691 = vmatpush1.bf16.msra.mxu1 %v4583_v40 }
 0x1d8   :  { %1610 = vmatprep.subr.bf16.mxu0 %v4588_v41  ;;  %1692 = vmatprep.subr.bf16.mxu1 %v4591_v42 }
 0x1db   :  { %1611 = vmatpush1.bf16.msra.mxu0 %v4586_v43  ;;  %1693 = vmatpush1.bf16.msra.mxu1 %v4589_v44 }
 0x1dc   :  { %1612 = vmatprep.subr.bf16.mxu0 %v4594_v45  ;;  %1694 = vmatprep.subr.bf16.mxu1 %v4597_v46 }
 0x1df   :  { %1613 = vmatpush1.bf16.msra.mxu0 %v4592_v47  ;;  %1695 = vmatpush1.bf16.msra.mxu1 %v4595_v48 }
 0x1e0   :  { %4319 = vmatprep.subr.bf16.mxu0 %v4598_v50  ;;  %4341 = vmatprep.subr.bf16.mxu1 %v4599_v51 }
 0x1e2   :  { %1615 = vmatmul.mubr.bf16.vlgmr.msra.gmra.mrb[8].mxu0 %v749_v54  ;;  %1697 = vmatmul.mubr.bf16.vlgmr.msra.gmra.mrb[8].mxu1 %v749_v54 }
 0x1e3   :  { %4320 = vmatpush3.bf16.msra.mxu0 %v4600_v52  ;;  %4342 = vmatpush3.bf16.msra.mxu1 %v4601_v53 }
 0x1e4   :  { %4321 = vmatprep.subr.bf16.mxu0 %v4602_v55  ;;  %4343 = vmatprep.subr.bf16.mxu1 %v4603_v56  ;;  %v4062_v56 = vld [vmem:[%s5528_s9] ss:$0 sm:$0xff] }
 0x1e7   :  { %4322 = vmatpush3.bf16.msra.mxu0 %v4604_v57  ;;  %4344 = vmatpush3.bf16.msra.mxu1 %v4605_v58 }
 0x1e8   :  { %4323 = vmatprep.subr.bf16.mxu0 %v4606_v33  ;;  %4345 = vmatprep.subr.bf16.mxu1 %v4607_v59 }
 0x1eb   :  { %4324 = vmatpush3.bf16.msra.mxu0 %v4608_v60  ;;  %4346 = vmatpush3.bf16.msra.mxu1 %v4609_v61 }
 0x1ec   :  { %4325 = vmatprep.subr.bf16.mxu0 %v4610_v62  ;;  %4347 = vmatprep.subr.bf16.mxu1 %v4611_v63 }
 0x1ef   :  { %4326 = vmatpush3.bf16.msra.mxu0 %v4612_v4  ;;  %4348 = vmatpush3.bf16.msra.mxu1 %v4613_v5  ;;  %v2057_v4 = vand.u32 127, %v719_v8  ;;  %v4639_v8 = vld [vmem:[#allocation13 + $0x28] ss:$16 sps:$4 sm:$0xff]  }
 0x1f0   :  { %4327 = vmatprep.subr.bf16.mxu0 %v4614_v6  ;;  %4349 = vmatprep.subr.bf16.mxu1 %v4615_v7  ;;  %v2059_v6 = vld [vmem:[#allocation5] sm:$0xff] }
 0x1f1   :  { %vm2058_vm0 = vcmp.lt.s32.totalorder %v2057_v4, 16  ;;  %v4690_v4 = vld [vmem:[#allocation14 + $0x40] ss:$16 sps:$4 sm:$0xff]  }
 0x1f3   :  { %4328 = vmatpush3.bf16.msra.mxu0 %v4616_v9  ;;  %4350 = vmatpush3.bf16.msra.mxu1 %v4617_v11  ;;  %v4630_v11 = vld [vmem:[#allocation13] ss:$16 sps:$4 sm:$0xff]  }
 0x1f4   :  { %4329 = vmatprep.subr.bf16.mxu0 %v4618_v13  ;;  %4351 = vmatprep.subr.bf16.mxu1 %v4619_v14  ;;  %v4632_v13 = vld [vmem:[#allocation13 + $0x4] ss:$16 sps:$4 sm:$0xff]   ;;  %v4633_v14 = vld [vmem:[#allocation13 + $0x8] ss:$16 sps:$4 sm:$0xff]  }
 0x1f7   :  { %4330 = vmatpush3.bf16.msra.mxu0 %v4620_v18  ;;  %4352 = vmatpush3.bf16.msra.mxu1 %v4621_v19  ;;  %v4635_v18 = vld [vmem:[#allocation13 + $0xc] ss:$16 sps:$4 sm:$0xff]   ;;  %v4638_v19 = vld [vmem:[#allocation13 + $0x24] ss:$16 sps:$4 sm:$0xff]  }
 0x1f8   :  { %4331 = vmatprep.subr.bf16.mxu0 %v4622_v21  ;;  %4353 = vmatprep.subr.bf16.mxu1 %v4623_v22  ;;  %v4641_v21 = vld [vmem:[#allocation13 + $0x2c] ss:$16 sps:$4 sm:$0xff]   ;;  %v4636_v22 = vld [vmem:[#allocation13 + $0x20] ss:$16 sps:$4 sm:$0xff]  }
 0x1fb   :  { %4332 = vmatpush3.bf16.msra.mxu0 %v4624_v23  ;;  %4354 = vmatpush3.bf16.msra.mxu1 %v4625_v24  ;;  %v4644_v23 = vld [vmem:[#allocation13 + $0x44] ss:$16 sps:$4 sm:$0xff]   ;;  %v4647_v24 = vld [vmem:[#allocation13 + $0x4c] ss:$16 sps:$4 sm:$0xff]  }
 0x1fc   :  { %4333 = vmatprep.subr.bf16.mxu0 %v4626_v2  ;;  %4355 = vmatprep.subr.bf16.mxu1 %v4627_v25  ;;  %v4642_v2 = vld [vmem:[#allocation13 + $0x40] ss:$16 sps:$4 sm:$0xff]   ;;  %v4645_v25 = vld [vmem:[#allocation13 + $0x48] ss:$16 sps:$4 sm:$0xff]  }
 0x1ff   :  { %4334 = vmatpush3.bf16.msra.mxu0 %v4628_v26  ;;  %4356 = vmatpush3.bf16.msra.mxu1 %v4629_v27  ;;  %v4650_v26 = vld [vmem:[#allocation13 + $0x64] ss:$16 sps:$4 sm:$0xff]   ;;  %v4653_v27 = vld [vmem:[#allocation13 + $0x6c] ss:$16 sps:$4 sm:$0xff]  }
 0x200   :  { %2264 = vmatprep.subr.bf16.mxu0 %v4632_v13  ;;  %2305 = vmatprep.subr.bf16.mxu1 %v4635_v18  ;;  %v4707_v13 = vld [vmem:[#allocation14 + $0x8c] ss:$16 sps:$4 sm:$0xff]   ;;  %v4705_v18 = vld [vmem:[#allocation14 + $0x88] ss:$16 sps:$4 sm:$0xff]  }
 0x2b5   :  { %v1616_v34 = vpop.f32.mrb[8].mxu0  ;;  %v1698_v35 = vpop.f32.mrb[8].mxu1 }
 0x2b6   :  { %v4363_v36 = vadd.f32 %v1616_v34, %v884_v29  ;;  %v4365_v37 = vadd.f32 %v1698_v35, %v892_v30  ;;  %v1618_v38 = vpop.f32.mrb[9].mxu0  ;;  %v1700_v39 = vpop.f32.mrb[9].mxu1  ;;  %v4651_v29 = vld [vmem:[#allocation13 + $0x68] ss:$16 sps:$4 sm:$0xff]   ;;  %v4656_v30 = vld [vmem:[#allocation13 + $0x84] ss:$16 sps:$4 sm:$0xff]  }
 0x2b7   :  { %v4364_v40 = vadd.f32 %v1618_v38, %v888_v31  ;;  %v4366_v41 = vadd.f32 %v1700_v39, %v896_v32  ;;  %v1620_v42 = vpop.f32.mrb[10].mxu0  ;;  %v1702_v43 = vpop.f32.mrb[10].mxu1  ;;  %v4659_v31 = vld [vmem:[#allocation13 + $0x8c] ss:$16 sps:$4 sm:$0xff]   ;;  %v4654_v32 = vld [vmem:[#allocation13 + $0x80] ss:$16 sps:$4 sm:$0xff]  }
 0x2b8   :  { %v1705_v44 = vmax.f32 %v4363_v36, 0.0  ;;  %v1707_v45 = vmax.f32 %v4365_v37, 0.0  ;;  %v1621_v46 = vpop.f32.mrb[11].mxu0  ;;  %v1703_v47 = vpop.f32.mrb[11].mxu1  ;;  %v4657_v34 = vld [vmem:[#allocation13 + $0x88] ss:$16 sps:$4 sm:$0xff]  }
 0x2b9   :  { %v1706_v48 = vmax.f32 %v4364_v40, 0.0  ;;  %v1708_v49 = vmax.f32 %v4366_v41, 0.0  ;;  %v4660_v39 = vld [vmem:[#allocation13 + $0xa0] ss:$16 sps:$4 sm:$0xff]   ;;  %v4662_v40 = vld [vmem:[#allocation13 + $0xa4] ss:$16 sps:$4 sm:$0xff]  }
 0x2ba   :  { %v1709_v52 = vpack.c.bf16 %v1705_v44, %v1705_v44  ;;  %v1711_v53 = vpack.c.bf16 %v1707_v45, %v1707_v45  ;;  %v4663_v41 = vld [vmem:[#allocation13 + $0xa8] ss:$16 sps:$4 sm:$0xff]   ;;  %v4665_v42 = vld [vmem:[#allocation13 + $0xac] ss:$16 sps:$4 sm:$0xff]   ;;  %v4668_v43 = vld [vmem:[#allocation13 + $0xc4] ss:$16 sps:$4 sm:$0xff]  }
 0x2bb   :  { %v1710_v50 = vpack.c.bf16 %v1706_v48, %v1706_v48  ;;  %v1712_v51 = vpack.c.bf16 %v1708_v49, %v1708_v49  ;;  %v4671_v44 = vld [vmem:[#allocation13 + $0xcc] ss:$16 sps:$4 sm:$0xff]   ;;  %v4666_v45 = vld [vmem:[#allocation13 + $0xc0] ss:$16 sps:$4 sm:$0xff]   ;;  %v4669_v46 = vld [vmem:[#allocation13 + $0xc8] ss:$16 sps:$4 sm:$0xff]  }
 0x2bc   :  { %v4674_v47 = vld [vmem:[#allocation13 + $0xe4] ss:$16 sps:$4 sm:$0xff]   ;;  %v4677_v48 = vld [vmem:[#allocation13 + $0xec] ss:$16 sps:$4 sm:$0xff]   ;;  %v4672_v49 = vld [vmem:[#allocation13 + $0xe0] ss:$16 sps:$4 sm:$0xff]  }
 0x2bd   :  { %2008 = vmatprep.mubr.bf16.mxu0 %v1710_v50  ;;  %2048 = vmatprep.mubr.bf16.mxu1 %v1712_v51  ;;  %v4675_v50 = vld [vmem:[#allocation13 + $0xe8] ss:$16 sps:$4 sm:$0xff]   ;;  %v4680_v51 = vld [vmem:[#allocation14 + $0x4] ss:$16 sps:$4 sm:$0xff]  }
 0x2be   :  { %2009 = vmatmul.mubr.bf16.vlgmr.msra.gmra.mrb[12].mxu0 %v1709_v52  ;;  %2049 = vmatmul.mubr.bf16.vlgmr.msra.gmra.mrb[12].mxu1 %v1711_v53  ;;  %v4683_v52 = vld [vmem:[#allocation14 + $0xc] ss:$16 sps:$4 sm:$0xff]  }
 0x2bf   :  { %2296 = vmatprep.mubr.bf16.mxu0 %v5225_v0  ;;  %2337 = vmatprep.mubr.bf16.mxu1 %v5225_v0 }
 0x2c0   :  { %2265 = vmatpush1.bf16.msra.mxu0 %v4630_v11  ;;  %2306 = vmatpush1.bf16.msra.mxu1 %v4633_v14  ;;  %v4704_v11 = vld [vmem:[#allocation14 + $0x84] ss:$16 sps:$4 sm:$0xff]   ;;  %v4702_v14 = vld [vmem:[#allocation14 + $0x80] ss:$16 sps:$4 sm:$0xff]  }
 0x2c1   :  { %2266 = vmatprep.subr.bf16.mxu0 %v4638_v19  ;;  %2307 = vmatprep.subr.bf16.mxu1 %v4641_v21  ;;  %v4710_v19 = vld [vmem:[#allocation14 + $0xa4] ss:$16 sps:$4 sm:$0xff]   ;;  %v4713_v21 = vld [vmem:[#allocation14 + $0xac] ss:$16 sps:$4 sm:$0xff]  }
 0x2c4   :  { %2267 = vmatpush1.bf16.msra.mxu0 %v4636_v22  ;;  %2308 = vmatpush1.bf16.msra.mxu1 %v4639_v8  ;;  %v4708_v22 = vld [vmem:[#allocation14 + $0xa0] ss:$16 sps:$4 sm:$0xff]   ;;  %v4711_v8 = vld [vmem:[#allocation14 + $0xa8] ss:$16 sps:$4 sm:$0xff]  }
 0x2c5   :  { %2268 = vmatprep.subr.bf16.mxu0 %v4644_v23  ;;  %2309 = vmatprep.subr.bf16.mxu1 %v4647_v24  ;;  %v4716_v23 = vld [vmem:[#allocation14 + $0xc4] ss:$16 sps:$4 sm:$0xff]   ;;  %v4719_v24 = vld [vmem:[#allocation14 + $0xcc] ss:$16 sps:$4 sm:$0xff]  }
 0x2c8   :  { %2269 = vmatpush1.bf16.msra.mxu0 %v4642_v2  ;;  %2310 = vmatpush1.bf16.msra.mxu1 %v4645_v25  ;;  %v4714_v2 = vld [vmem:[#allocation14 + $0xc0] ss:$16 sps:$4 sm:$0xff]   ;;  %v4717_v25 = vld [vmem:[#allocation14 + $0xc8] ss:$16 sps:$4 sm:$0xff]  }
 0x2c9   :  { %2270 = vmatprep.subr.bf16.mxu0 %v4650_v26  ;;  %2311 = vmatprep.subr.bf16.mxu1 %v4653_v27  ;;  %v4722_v26 = vld [vmem:[#allocation14 + $0xe4] ss:$16 sps:$4 sm:$0xff]   ;;  %v4725_v27 = vld [vmem:[#allocation14 + $0xec] ss:$16 sps:$4 sm:$0xff]  }
 0x2cc   :  { %2271 = vmatpush1.bf16.msra.mxu0 %v4648_v28  ;;  %2312 = vmatpush1.bf16.msra.mxu1 %v4651_v29  ;;  %v4720_v28 = vld [vmem:[#allocation14 + $0xe0] ss:$16 sps:$4 sm:$0xff]   ;;  %v4723_v29 = vld [vmem:[#allocation14 + $0xe8] ss:$16 sps:$4 sm:$0xff]  }
 0x2cd   :  { %2272 = vmatprep.subr.bf16.mxu0 %v4656_v30  ;;  %2313 = vmatprep.subr.bf16.mxu1 %v4659_v31  ;;  %v4728_v30 = vld [vmem:[#allocation14 + $0x104] ss:$16 sps:$4 sm:$0xff]   ;;  %v4731_v31 = vld [vmem:[#allocation14 + $0x10c] ss:$16 sps:$4 sm:$0xff]  }
 0x2d0   :  { %2273 = vmatpush1.bf16.msra.mxu0 %v4654_v32  ;;  %2314 = vmatpush1.bf16.msra.mxu1 %v4657_v34  ;;  %v4726_v32 = vld [vmem:[#allocation14 + $0x100] ss:$16 sps:$4 sm:$0xff]   ;;  %v4729_v34 = vld [vmem:[#allocation14 + $0x108] ss:$16 sps:$4 sm:$0xff]  }
 0x2d1   :  { %2274 = vmatprep.subr.bf16.mxu0 %v4662_v40  ;;  %2315 = vmatprep.subr.bf16.mxu1 %v4665_v42  ;;  %v4743_v40 = vld [vmem:[#allocation14 + $0x14c] ss:$16 sps:$4 sm:$0xff]   ;;  %v4741_v42 = vld [vmem:[#allocation14 + $0x148] ss:$16 sps:$4 sm:$0xff]  }
 0x2d4   :  { %2275 = vmatpush1.bf16.msra.mxu0 %v4660_v39  ;;  %2316 = vmatpush1.bf16.msra.mxu1 %v4663_v41  ;;  %v4740_v39 = vld [vmem:[#allocation14 + $0x144] ss:$16 sps:$4 sm:$0xff]   ;;  %v4738_v41 = vld [vmem:[#allocation14 + $0x140] ss:$16 sps:$4 sm:$0xff]  }
 0x2d5   :  { %2276 = vmatprep.subr.bf16.mxu0 %v4668_v43  ;;  %2317 = vmatprep.subr.bf16.mxu1 %v4671_v44  ;;  %v4746_v43 = vld [vmem:[#allocation14 + $0x164] ss:$16 sps:$4 sm:$0xff]   ;;  %v4749_v44 = vld [vmem:[#allocation14 + $0x16c] ss:$16 sps:$4 sm:$0xff]  }
 0x2d8   :  { %2277 = vmatpush1.bf16.msra.mxu0 %v4666_v45  ;;  %2318 = vmatpush1.bf16.msra.mxu1 %v4669_v46  ;;  %v4744_v45 = vld [vmem:[#allocation14 + $0x160] ss:$16 sps:$4 sm:$0xff]   ;;  %v4747_v46 = vld [vmem:[#allocation14 + $0x168] ss:$16 sps:$4 sm:$0xff]  }
 0x2d9   :  { %2278 = vmatprep.subr.bf16.mxu0 %v4674_v47  ;;  %2319 = vmatprep.subr.bf16.mxu1 %v4677_v48  ;;  %v4752_v47 = vld [vmem:[#allocation14 + $0x184] ss:$16 sps:$4 sm:$0xff]   ;;  %v4755_v48 = vld [vmem:[#allocation14 + $0x18c] ss:$16 sps:$4 sm:$0xff]  }
 0x2dc   :  { %2279 = vmatpush1.bf16.msra.mxu0 %v4672_v49  ;;  %2320 = vmatpush1.bf16.msra.mxu1 %v4675_v50  ;;  %v4750_v49 = vld [vmem:[#allocation14 + $0x180] ss:$16 sps:$4 sm:$0xff]   ;;  %v4753_v50 = vld [vmem:[#allocation14 + $0x188] ss:$16 sps:$4 sm:$0xff]  }
 0x2dd   :  { %3174 = vmatprep.subr.bf16.mxu0 %v4680_v51  ;;  %3256 = vmatprep.subr.bf16.mxu1 %v4683_v52  ;;  %v4758_v51 = vld [vmem:[#allocation14 + $0x1a4] ss:$16 sps:$4 sm:$0xff]   ;;  %v4761_v52 = vld [vmem:[#allocation14 + $0x1ac] ss:$16 sps:$4 sm:$0xff]  }
 0x391   :  { %v4335_v54 = vpop.f32.mrb[12].mxu0  ;;  %v4357_v55 = vpop.f32.mrb[12].mxu1 }
 0x392   :  { %v4336_v57 = vpop.f32.mrb[13].mxu0  ;;  %v4358_v58 = vpop.f32.mrb[13].mxu1 }
 0x393   :  { %v4337_v33 = vadd.f32 %v4336_v57, %v4335_v54  ;;  %v4359_v59 = vadd.f32 %v4358_v58, %v4357_v55  ;;  %v4338_v60 = vpop.f32.mrb[14].mxu0  ;;  %v4360_v61 = vpop.f32.mrb[14].mxu1  ;;  %v4681_v57 = vld [vmem:[#allocation14 + $0x8] ss:$16 sps:$4 sm:$0xff]  }
 0x394   :  { %v4339_v62 = vpop.f32.mrb[15].mxu0  ;;  %v4361_v63 = vpop.f32.mrb[15].mxu1  ;;  %v4684_v60 = vld [vmem:[#allocation14 + $0x20] ss:$16 sps:$4 sm:$0xff]   ;;  %v4687_v61 = vld [vmem:[#allocation14 + $0x28] ss:$16 sps:$4 sm:$0xff]  }
 0x395   :  { %v2011_v5 = vadd.f32 %v4337_v33, %v4062_v56  ;;  %v4678_v56 = vld [vmem:[#allocation14] ss:$16 sps:$4 sm:$0xff]   ;;  %v4686_v33 = vld [vmem:[#allocation14 + $0x24] ss:$16 sps:$4 sm:$0xff]   ;;  %v4695_v63 = vld [vmem:[#allocation14 + $0x4c] ss:$16 sps:$4 sm:$0xff]  }
 0x396   :  { %v4692_v62 = vld [vmem:[#allocation14 + $0x44] ss:$16 sps:$4 sm:$0xff]  }
 0x397   :  { %v2051_v7 = vadd.f32 %v4359_v59, %v2011_v5  ;;  %v4689_v59 = vld [vmem:[#allocation14 + $0x2c] ss:$16 sps:$4 sm:$0xff]   ;;  %v4693_v5 = vld [vmem:[#allocation14 + $0x48] ss:$16 sps:$4 sm:$0xff]  }
 0x399   :  { %v2060_v0 = vadd.f32 %v2059_v6, %v2051_v7  ;;  %v4698_v6 = vld [vmem:[#allocation14 + $0x64] ss:$16 sps:$4 sm:$0xff]   ;;  %v4701_v7 = vld [vmem:[#allocation14 + $0x6c] ss:$16 sps:$4 sm:$0xff]  }
 0x39b   :  { %v2061_v9 = vsel %vm2058_vm0, %v2060_v0, -1e+30  ;;  %v4696_v0 = vld [vmem:[#allocation14 + $0x60] ss:$16 sps:$4 sm:$0xff]  }
 0x39c   :  { %2062 = vmax.xlane.f32.xlu0 %v2061_v9 }
 0x429   :  { %v2063_v35 = vpop.xlane.xlu0 %2062 }
 0x42a   :  { %v2064_v36 = vsub.f32 %v2061_v9, %v2063_v35  ;;  %v4699_v9 = vld [vmem:[#allocation14 + $0x68] ss:$16 sps:$4 sm:$0xff]   ;;  %v4734_v35 = vld [vmem:[#allocation14 + $0x124] ss:$16 sps:$4 sm:$0xff]  }
 0x42c   :  { %v2065_v37 = vmul.f32 1.442695, %v2064_v36  ;;  %v4737_v36 = vld [vmem:[#allocation14 + $0x12c] ss:$16 sps:$4 sm:$0xff]  }
 0x42e   :  { %4966 = vpow2.f32 %v2065_v37  ;;  %v4732_v37 = vld [vmem:[#allocation14 + $0x120] ss:$16 sps:$4 sm:$0xff]  }
 0x438   :  { %v4967_v38 = vpop.eup %4966 }
 0x439   :  { %2067 = vadd.xlane.f32.xlu0 %v4967_v38 }
 0x4c6   :  { %v2068_v53 = vpop.xlane.xlu0 %2067 }
 0x4c7   :  { %4968 = vrcp.f32 %v2068_v53  ;;  %v4756_v53 = vld [vmem:[#allocation14 + $0x1a0] ss:$16 sps:$4 sm:$0xff]  }
 0x4d1   :  { %v4969_v54 = vpop.eup %4968 }
 0x4d2   :  { %v2070_v55 = vmul.f32 %v4969_v54, %v4967_v38  ;;  %v4735_v38 = vld [vmem:[#allocation14 + $0x128] ss:$16 sps:$4 sm:$0xff]  }
 0x4d3   :  { %v4759_v54 = vld [vmem:[#allocation14 + $0x1a8] ss:$16 sps:$4 sm:$0xff]  }
 0x4d4   :  { %v2071_v58 = vpack.c.bf16 %v2070_v55, %v2070_v55  ;;  %v4764_v55 = vld [vmem:[#allocation14 + $0x1c4] ss:$16 sps:$4 sm:$0xff]  }
 0x4d6   :  { %2297 = vmatmul.mubr.bf16.vlgmr.msra.gmra.mrb[16].mxu0 %v2071_v58  ;;  %2338 = vmatmul.mubr.bf16.vlgmr.msra.gmra.mrb[16].mxu1 %v2071_v58  ;;  %v4765_v58 = vld [vmem:[#allocation14 + $0x1c8] ss:$16 sps:$4 sm:$0xff]  }
 0x4d7   :  { %3175 = vmatpush1.bf16.msra.mxu0 %v4678_v56  ;;  %3257 = vmatpush1.bf16.msra.mxu1 %v4681_v57  ;;  %v4767_v56 = vld [vmem:[#allocation14 + $0x1cc] ss:$16 sps:$4 sm:$0xff]   ;;  %v4762_v57 = vld [vmem:[#allocation14 + $0x1c0] ss:$16 sps:$4 sm:$0xff]  }
 0x4d8   :  { %3176 = vmatprep.subr.bf16.mxu0 %v4686_v33  ;;  %3258 = vmatprep.subr.bf16.mxu1 %v4689_v59  ;;  %v4770_v33 = vld [vmem:[#allocation14 + $0x1e4] ss:$16 sps:$4 sm:$0xff]   ;;  %v4773_v59 = vld [vmem:[#allocation14 + $0x1ec] ss:$16 sps:$4 sm:$0xff]  }
 0x4db   :  { %3177 = vmatpush1.bf16.msra.mxu0 %v4684_v60  ;;  %3259 = vmatpush1.bf16.msra.mxu1 %v4687_v61  ;;  %v4768_v60 = vld [vmem:[#allocation14 + $0x1e0] ss:$16 sps:$4 sm:$0xff]   ;;  %v4771_v61 = vld [vmem:[#allocation14 + $0x1e8] ss:$16 sps:$4 sm:$0xff]  }
 0x4dc   :  { %3178 = vmatprep.subr.bf16.mxu0 %v4692_v62  ;;  %3260 = vmatprep.subr.bf16.mxu1 %v4695_v63  ;;  %v4776_v62 = vld [vmem:[#allocation14 + $0x204] ss:$16 sps:$4 sm:$0xff]   ;;  %v4779_v63 = vld [vmem:[#allocation14 + $0x20c] ss:$16 sps:$4 sm:$0xff]  }
 0x4df   :  { %3179 = vmatpush1.bf16.msra.mxu0 %v4690_v4  ;;  %3261 = vmatpush1.bf16.msra.mxu1 %v4693_v5  ;;  %v2350_v4 = vld [vmem:[%s5524_s5] sm:$0xf] }
 0x4e0   :  { %3180 = vmatprep.subr.bf16.mxu0 %v4698_v6  ;;  %3262 = vmatprep.subr.bf16.mxu1 %v4701_v7  ;;  %v2355_v5 = vrot.slane %v2350_v4, %v5442_v10  ;;  %v2363_v6 = vrot.slane %v2350_v4, %v5451_v15 }
 0x4e3   :  { %3181 = vmatpush1.bf16.msra.mxu0 %v4696_v0  ;;  %3263 = vmatpush1.bf16.msra.mxu1 %v4699_v9  ;;  %v2359_v9 = vrot.slane %v2350_v4, %v5447_v12 }
 0x4e4   :  { %3182 = vmatprep.subr.bf16.mxu0 %v4704_v11  ;;  %3264 = vmatprep.subr.bf16.mxu1 %v4707_v13  ;;  %v2367_v11 = vrot.slane %v2350_v4, %v5453_v17  ;;  %v4825_v4 = vld [vmem:[#allocation14 + $0x308] ss:$16 sps:$4 sm:$0xff]  }
 0x4e7   :  { %3183 = vmatpush1.bf16.msra.mxu0 %v4702_v14  ;;  %3265 = vmatpush1.bf16.msra.mxu1 %v4705_v18 }
 0x4e8   :  { %3184 = vmatprep.subr.bf16.mxu0 %v4710_v19  ;;  %3266 = vmatprep.subr.bf16.mxu1 %v4713_v21 }
 0x4eb   :  { %3185 = vmatpush1.bf16.msra.mxu0 %v4708_v22  ;;  %3267 = vmatpush1.bf16.msra.mxu1 %v4711_v8 }
 0x4ec   :  { %3186 = vmatprep.subr.bf16.mxu0 %v4716_v23  ;;  %3268 = vmatprep.subr.bf16.mxu1 %v4719_v24 }
 0x4ef   :  { %3187 = vmatpush1.bf16.msra.mxu0 %v4714_v2  ;;  %3269 = vmatpush1.bf16.msra.mxu1 %v4717_v25 }
 0x4f0   :  { %3188 = vmatprep.subr.bf16.mxu0 %v4722_v26  ;;  %3270 = vmatprep.subr.bf16.mxu1 %v4725_v27 }
 0x4f3   :  { %3189 = vmatpush1.bf16.msra.mxu0 %v4720_v28  ;;  %3271 = vmatpush1.bf16.msra.mxu1 %v4723_v29 }
 0x4f4   :  { %3190 = vmatprep.subr.bf16.mxu0 %v4728_v30  ;;  %3272 = vmatprep.subr.bf16.mxu1 %v4731_v31 }
 0x4f7   :  { %3191 = vmatpush1.bf16.msra.mxu0 %v4726_v32  ;;  %3273 = vmatpush1.bf16.msra.mxu1 %v4729_v34  ;;  %v4777_v32 = vld [vmem:[#allocation14 + $0x208] ss:$16 sps:$4 sm:$0xff]  }
 0x4f8   :  { %3192 = vmatprep.subr.bf16.mxu0 %v4734_v35  ;;  %3274 = vmatprep.subr.bf16.mxu1 %v4737_v36  ;;  %v4780_v36 = vld [vmem:[#allocation14 + $0x220] ss:$16 sps:$4 sm:$0xff]  }
 0x4fb   :  { %3193 = vmatpush1.bf16.msra.mxu0 %v4732_v37  ;;  %3275 = vmatpush1.bf16.msra.mxu1 %v4735_v38  ;;  %v4783_v37 = vld [vmem:[#allocation14 + $0x228] ss:$16 sps:$4 sm:$0xff]   ;;  %v4788_v38 = vld [vmem:[#allocation14 + $0x244] ss:$16 sps:$4 sm:$0xff]  }
 0x4fc   :  { %3194 = vmatprep.subr.bf16.mxu0 %v4740_v39  ;;  %3276 = vmatprep.subr.bf16.mxu1 %v4743_v40  ;;  %v4791_v39 = vld [vmem:[#allocation14 + $0x24c] ss:$16 sps:$4 sm:$0xff]   ;;  %v4786_v40 = vld [vmem:[#allocation14 + $0x240] ss:$16 sps:$4 sm:$0xff]  }
 0x4ff   :  { %3195 = vmatpush1.bf16.msra.mxu0 %v4738_v41  ;;  %3277 = vmatpush1.bf16.msra.mxu1 %v4741_v42  ;;  %v4789_v41 = vld [vmem:[#allocation14 + $0x248] ss:$16 sps:$4 sm:$0xff]   ;;  %v4794_v42 = vld [vmem:[#allocation14 + $0x264] ss:$16 sps:$4 sm:$0xff]  }
 0x500   :  { %3196 = vmatprep.subr.bf16.mxu0 %v4746_v43  ;;  %3278 = vmatprep.subr.bf16.mxu1 %v4749_v44  ;;  %v4797_v43 = vld [vmem:[#allocation14 + $0x26c] ss:$16 sps:$4 sm:$0xff]   ;;  %v4792_v44 = vld [vmem:[#allocation14 + $0x260] ss:$16 sps:$4 sm:$0xff]  }
 0x503   :  { %3197 = vmatpush1.bf16.msra.mxu0 %v4744_v45  ;;  %3279 = vmatpush1.bf16.msra.mxu1 %v4747_v46  ;;  %v4795_v45 = vld [vmem:[#allocation14 + $0x268] ss:$16 sps:$4 sm:$0xff]   ;;  %v4800_v46 = vld [vmem:[#allocation14 + $0x284] ss:$16 sps:$4 sm:$0xff]  }
 0x504   :  { %3198 = vmatprep.subr.bf16.mxu0 %v4752_v47  ;;  %3280 = vmatprep.subr.bf16.mxu1 %v4755_v48  ;;  %v4803_v47 = vld [vmem:[#allocation14 + $0x28c] ss:$16 sps:$4 sm:$0xff]   ;;  %v4798_v48 = vld [vmem:[#allocation14 + $0x280] ss:$16 sps:$4 sm:$0xff]  }
 0x507   :  { %3199 = vmatpush1.bf16.msra.mxu0 %v4750_v49  ;;  %3281 = vmatpush1.bf16.msra.mxu1 %v4753_v50  ;;  %v4801_v49 = vld [vmem:[#allocation14 + $0x288] ss:$16 sps:$4 sm:$0xff]   ;;  %v4806_v50 = vld [vmem:[#allocation14 + $0x2a4] ss:$16 sps:$4 sm:$0xff]  }
 0x508   :  { %3200 = vmatprep.subr.bf16.mxu0 %v4758_v51  ;;  %3282 = vmatprep.subr.bf16.mxu1 %v4761_v52  ;;  %v4809_v51 = vld [vmem:[#allocation14 + $0x2ac] ss:$16 sps:$4 sm:$0xff]   ;;  %v4804_v52 = vld [vmem:[#allocation14 + $0x2a0] ss:$16 sps:$4 sm:$0xff]  }
 0x50b   :  { %3201 = vmatpush1.bf16.msra.mxu0 %v4756_v53  ;;  %3283 = vmatpush1.bf16.msra.mxu1 %v4759_v54  ;;  %v4807_v53 = vld [vmem:[#allocation14 + $0x2a8] ss:$16 sps:$4 sm:$0xff]   ;;  %v4812_v54 = vld [vmem:[#allocation14 + $0x2c4] ss:$16 sps:$4 sm:$0xff]  }
 0x50c   :  { %3202 = vmatprep.subr.bf16.mxu0 %v4764_v55  ;;  %3284 = vmatprep.subr.bf16.mxu1 %v4767_v56  ;;  %v4815_v55 = vld [vmem:[#allocation14 + $0x2cc] ss:$16 sps:$4 sm:$0xff]   ;;  %v4810_v56 = vld [vmem:[#allocation14 + $0x2c0] ss:$16 sps:$4 sm:$0xff]  }
 0x50f   :  { %3203 = vmatpush1.bf16.msra.mxu0 %v4762_v57  ;;  %3285 = vmatpush1.bf16.msra.mxu1 %v4765_v58  ;;  %v4813_v57 = vld [vmem:[#allocation14 + $0x2c8] ss:$16 sps:$4 sm:$0xff]   ;;  %v4818_v58 = vld [vmem:[#allocation14 + $0x2e4] ss:$16 sps:$4 sm:$0xff]  }
 0x510   :  { %3204 = vmatprep.subr.bf16.mxu0 %v4770_v33  ;;  %3286 = vmatprep.subr.bf16.mxu1 %v4773_v59  ;;  %v4821_v33 = vld [vmem:[#allocation14 + $0x2ec] ss:$16 sps:$4 sm:$0xff]   ;;  %v4816_v59 = vld [vmem:[#allocation14 + $0x2e0] ss:$16 sps:$4 sm:$0xff]  }
 0x513   :  { %3205 = vmatpush1.bf16.msra.mxu0 %v4768_v60  ;;  %3287 = vmatpush1.bf16.msra.mxu1 %v4771_v61  ;;  %v4819_v60 = vld [vmem:[#allocation14 + $0x2e8] ss:$16 sps:$4 sm:$0xff]   ;;  %v4824_v61 = vld [vmem:[#allocation14 + $0x304] ss:$16 sps:$4 sm:$0xff]  }
 0x514   :  { %3215 = vmatprep.subr.bf16.mxu0 %v4776_v62  ;;  %3297 = vmatprep.subr.bf16.mxu1 %v4779_v63  ;;  %v4827_v62 = vld [vmem:[#allocation14 + $0x30c] ss:$16 sps:$4 sm:$0xff]   ;;  %v4822_v63 = vld [vmem:[#allocation14 + $0x300] ss:$16 sps:$4 sm:$0xff]  }
 0x5a9   :  { %v2298_v7 = vpop.f32.mrb[16].mxu0  ;;  %v2339_v0 = vpop.f32.mrb[16].mxu1 }
 0x5aa   :  { %v2346_v13 = vadd.f32 %v2298_v7, %v5459_v1  ;;  %v2348_v14 = vadd.f32 %v2339_v0, %v5463_v16  ;;  %v2300_v18 = vpop.f32.mrb[17].mxu0  ;;  %v2341_v19 = vpop.f32.mrb[17].mxu1  ;;  %v4774_v16 = vld [vmem:[#allocation14 + $0x200] ss:$16 sps:$4 sm:$0xff]   ;;  %v4831_v0 = vld [vmem:[#allocation14 + $0x328] ss:$16 sps:$4 sm:$0xff]  }
 0x5ab   :  { %v2347_v21 = vadd.f32 %v2300_v18, %v5461_v3  ;;  %v2349_v22 = vadd.f32 %v2341_v19, %v5465_v20  ;;  %v2302_v8 = vpop.f32.mrb[18].mxu0  ;;  %v2343_v23 = vpop.f32.mrb[18].mxu1  ;;  %v4782_v3 = vld [vmem:[#allocation14 + $0x224] ss:$16 sps:$4 sm:$0xff]   ;;  %v4785_v20 = vld [vmem:[#allocation14 + $0x22c] ss:$16 sps:$4 sm:$0xff]  }
 0x5ac   :  { %v2372_v24 = vadd.f32 %v2355_v5, %v2346_v13  ;;  %v5492_v2 = vadd.f32 %v2363_v6, %v2348_v14  ;;  %v2303_v25 = vpop.f32.mrb[19].mxu0  ;;  %v2344_v26 = vpop.f32.mrb[19].mxu1  ;;  %v4830_v5 = vld [vmem:[#allocation14 + $0x324] ss:$16 sps:$4 sm:$0xff]   ;;  %v4833_v6 = vld [vmem:[#allocation14 + $0x32c] ss:$16 sps:$4 sm:$0xff]  }
 0x5ad   :  { %v2373_v27 = vadd.f32 %v2359_v9, %v2347_v21  ;;  %v2375_v28 = vadd.f32 %v2367_v11, %v2349_v22  ;;  %v4828_v7 = vld [vmem:[#allocation14 + $0x320] ss:$16 sps:$4 sm:$0xff]   ;;  %v4836_v9 = vld [vmem:[#allocation14 + $0x344] ss:$16 sps:$4 sm:$0xff]   ;;  %v4839_v11 = vld [vmem:[#allocation14 + $0x34c] ss:$16 sps:$4 sm:$0xff]  }
 0x5ae   :  { %v2376_v29 = vmax.f32 %v2372_v24, 0.0  ;;  %v4834_v13 = vld [vmem:[#allocation14 + $0x340] ss:$16 sps:$4 sm:$0xff]   ;;  %v4837_v14 = vld [vmem:[#allocation14 + $0x348] ss:$16 sps:$4 sm:$0xff]  }
 0x5af   :  { %v2377_v30 = vmax.f32 %v2373_v27, 0.0  ;;  %v2379_v1 = vmax.f32 %v2375_v28, 0.0  ;;  %v4842_v18 = vld [vmem:[#allocation14 + $0x364] ss:$16 sps:$4 sm:$0xff]   ;;  %v4845_v19 = vld [vmem:[#allocation14 + $0x36c] ss:$16 sps:$4 sm:$0xff]  }
 0x5b0   :  { %v2380_v34 = vpack.c.bf16 %v2376_v29, %v2376_v29  ;;  %v4840_v21 = vld [vmem:[#allocation14 + $0x360] ss:$16 sps:$4 sm:$0xff]   ;;  %v4843_v22 = vld [vmem:[#allocation14 + $0x368] ss:$16 sps:$4 sm:$0xff]   ;;  %v4848_v8 = vld [vmem:[#allocation14 + $0x384] ss:$16 sps:$4 sm:$0xff]  }
 0x5b1   :  { %v2381_v31 = vpack.c.bf16 %v2377_v30, %v2377_v30  ;;  %v2383_v35 = vpack.c.bf16 %v2379_v1, %v2379_v1  ;;  %v4851_v23 = vld [vmem:[#allocation14 + $0x38c] ss:$16 sps:$4 sm:$0xff]   ;;  %v4846_v24 = vld [vmem:[#allocation14 + $0x380] ss:$16 sps:$4 sm:$0xff]   ;;  %v4849_v25 = vld [vmem:[#allocation14 + $0x388] ss:$16 sps:$4 sm:$0xff]  }
 0x5b2   :  { %v4854_v26 = vld [vmem:[#allocation14 + $0x3a4] ss:$16 sps:$4 sm:$0xff]   ;;  %v4857_v27 = vld [vmem:[#allocation14 + $0x3ac] ss:$16 sps:$4 sm:$0xff]   ;;  %v4852_v28 = vld [vmem:[#allocation14 + $0x3a0] ss:$16 sps:$4 sm:$0xff]  }
 0x5b3   :  { %3206 = vmatprep.mubr.bf16.mxu0 %v2381_v31  ;;  %3288 = vmatprep.mubr.bf16.mxu1 %v2381_v31  ;;  %v4855_v29 = vld [vmem:[#allocation14 + $0x3a8] ss:$16 sps:$4 sm:$0xff]   ;;  %v4860_v30 = vld [vmem:[#allocation14 + $0x3c4] ss:$16 sps:$4 sm:$0xff]   ;;  %v4863_v1 = vld [vmem:[#allocation14 + $0x3cc] ss:$16 sps:$4 sm:$0xff]  }
 0x5b4   :  { %3207 = vmatmul.mubr.bf16.vlgmr.msra.gmra.mrb[20].mxu0 %v2380_v34  ;;  %3289 = vmatmul.mubr.bf16.vlgmr.msra.gmra.mrb[20].mxu1 %v2380_v34  ;;  %v4858_v31 = vld [vmem:[#allocation14 + $0x3c0] ss:$16 sps:$4 sm:$0xff]   ;;  %v4869_v34 = vld [vmem:[#allocation14 + $0x3ec] ss:$16 sps:$4 sm:$0xff]  }
 0x5b5   :  { %3216 = vmatpush1.bf16.msra.mxu0 %v4774_v16  ;;  %3298 = vmatpush1.bf16.msra.mxu1 %v4777_v32  ;;  %v4861_v16 = vld [vmem:[#allocation14 + $0x3c8] ss:$16 sps:$4 sm:$0xff]   ;;  %v4866_v32 = vld [vmem:[#allocation14 + $0x3e4] ss:$16 sps:$4 sm:$0xff]  }
 0x5b6   :  { %3247 = vmatprep.mubr.bf16.mxu0 %v2383_v35  ;;  %3329 = vmatprep.mubr.bf16.mxu1 %v2383_v35  ;;  %v2378_v35 = vmax.f32 %v5492_v2, 0.0  ;;  %v4884_v2 = vld [vmem:[#allocation16 + $0x24] ss:$8 sps:$4 sm:$0xff]  }
 0x5b7   :  { %3217 = vmatprep.subr.bf16.mxu0 %v4782_v3  ;;  %3299 = vmatprep.subr.bf16.mxu1 %v4785_v20  ;;  %v4864_v3 = vld [vmem:[#allocation14 + $0x3e0] ss:$16 sps:$4 sm:$0xff]   ;;  %v4867_v20 = vld [vmem:[#allocation14 + $0x3e8] ss:$16 sps:$4 sm:$0xff]  }
 0x5b9   :  { %3218 = vmatpush1.bf16.msra.mxu0 %v4780_v36  ;;  %3300 = vmatpush1.bf16.msra.mxu1 %v4783_v37  ;;  %v4872_v36 = vld [vmem:[#allocation16 + $0x4] ss:$8 sps:$4 sm:$0xff]  }
 0x5ba   :  { %3219 = vmatprep.subr.bf16.mxu0 %v4788_v38  ;;  %3301 = vmatprep.subr.bf16.mxu1 %v4791_v39  ;;  %v4875_v37 = vld [vmem:[#allocation16 + $0x104] ss:$8 sps:$4 sm:$0xff]   ;;  %v4870_v38 = vld [vmem:[#allocation16] ss:$8 sps:$4 sm:$0xff]  }
 0x5bb   :  { %v4873_v39 = vld [vmem:[#allocation16 + $0x100] ss:$8 sps:$4 sm:$0xff]  }
 0x5bd   :  { %3220 = vmatpush1.bf16.msra.mxu0 %v4786_v40  ;;  %3302 = vmatpush1.bf16.msra.mxu1 %v4789_v41  ;;  %v2382_v40 = vpack.c.bf16 %v2378_v35, %v2378_v35  ;;  %v4878_v41 = vld [vmem:[#allocation16 + $0x14] ss:$8 sps:$4 sm:$0xff]   ;;  %v4954_v35 = vld [vmem:[#allocation16 + $0xe0] ss:$8 sps:$4 sm:$0xff]  }
 0x5be   :  { %3221 = vmatprep.subr.bf16.mxu0 %v4794_v42  ;;  %3303 = vmatprep.subr.bf16.mxu1 %v4797_v43  ;;  %v4881_v42 = vld [vmem:[#allocation16 + $0x114] ss:$8 sps:$4 sm:$0xff]   ;;  %v4876_v43 = vld [vmem:[#allocation16 + $0x10] ss:$8 sps:$4 sm:$0xff]  }
 0x5c1   :  { %3222 = vmatpush1.bf16.msra.mxu0 %v4792_v44  ;;  %3304 = vmatpush1.bf16.msra.mxu1 %v4795_v45  ;;  %v4879_v44 = vld [vmem:[#allocation16 + $0x110] ss:$8 sps:$4 sm:$0xff]   ;;  %v4887_v45 = vld [vmem:[#allocation16 + $0x124] ss:$8 sps:$4 sm:$0xff]  }
 0x5c2   :  { %3223 = vmatprep.subr.bf16.mxu0 %v4800_v46  ;;  %3305 = vmatprep.subr.bf16.mxu1 %v4803_v47  ;;  %v4882_v46 = vld [vmem:[#allocation16 + $0x20] ss:$8 sps:$4 sm:$0xff]  }
 0x5c3   :  { %v4885_v47 = vld [vmem:[#allocation16 + $0x120] ss:$8 sps:$4 sm:$0xff]  }
 0x5c5   :  { %3224 = vmatpush1.bf16.msra.mxu0 %v4798_v48  ;;  %3306 = vmatpush1.bf16.msra.mxu1 %v4801_v49  ;;  %v4890_v48 = vld [vmem:[#allocation16 + $0x34] ss:$8 sps:$4 sm:$0xff]  }
 0x5c6   :  { %3225 = vmatprep.subr.bf16.mxu0 %v4806_v50  ;;  %3307 = vmatprep.subr.bf16.mxu1 %v4809_v51  ;;  %v4893_v49 = vld [vmem:[#allocation16 + $0x134] ss:$8 sps:$4 sm:$0xff]   ;;  %v4888_v50 = vld [vmem:[#allocation16 + $0x30] ss:$8 sps:$4 sm:$0xff]  }
 0x5c7   :  { %v4891_v51 = vld [vmem:[#allocation16 + $0x130] ss:$8 sps:$4 sm:$0xff]  }
 0x5c9   :  { %3226 = vmatpush1.bf16.msra.mxu0 %v4804_v52  ;;  %3308 = vmatpush1.bf16.msra.mxu1 %v4807_v53  ;;  %v4896_v52 = vld [vmem:[#allocation16 + $0x44] ss:$8 sps:$4 sm:$0xff]  }
 0x5ca   :  { %3227 = vmatprep.subr.bf16.mxu0 %v4812_v54  ;;  %3309 = vmatprep.subr.bf16.mxu1 %v4815_v55  ;;  %v4899_v53 = vld [vmem:[#allocation16 + $0x144] ss:$8 sps:$4 sm:$0xff]   ;;  %v4894_v54 = vld [vmem:[#allocation16 + $0x40] ss:$8 sps:$4 sm:$0xff]  }
 0x5cb   :  { %v4897_v55 = vld [vmem:[#allocation16 + $0x140] ss:$8 sps:$4 sm:$0xff]  }
 0x5cd   :  { %3228 = vmatpush1.bf16.msra.mxu0 %v4810_v56  ;;  %3310 = vmatpush1.bf16.msra.mxu1 %v4813_v57  ;;  %v4902_v56 = vld [vmem:[#allocation16 + $0x54] ss:$8 sps:$4 sm:$0xff]  }
 0x5ce   :  { %3229 = vmatprep.subr.bf16.mxu0 %v4818_v58  ;;  %3311 = vmatprep.subr.bf16.mxu1 %v4821_v33  ;;  %v4905_v57 = vld [vmem:[#allocation16 + $0x154] ss:$8 sps:$4 sm:$0xff]   ;;  %v4900_v58 = vld [vmem:[#allocation16 + $0x50] ss:$8 sps:$4 sm:$0xff]  }
 0x5cf   :  { %v4903_v33 = vld [vmem:[#allocation16 + $0x150] ss:$8 sps:$4 sm:$0xff]  }
 0x5d1   :  { %3230 = vmatpush1.bf16.msra.mxu0 %v4816_v59  ;;  %3312 = vmatpush1.bf16.msra.mxu1 %v4819_v60  ;;  %v4908_v59 = vld [vmem:[#allocation16 + $0x64] ss:$8 sps:$4 sm:$0xff]  }
 0x5d2   :  { %3231 = vmatprep.subr.bf16.mxu0 %v4824_v61  ;;  %3313 = vmatprep.subr.bf16.mxu1 %v4827_v62  ;;  %v4911_v60 = vld [vmem:[#allocation16 + $0x164] ss:$8 sps:$4 sm:$0xff]   ;;  %v4906_v61 = vld [vmem:[#allocation16 + $0x60] ss:$8 sps:$4 sm:$0xff]  }
 0x5d3   :  { %v4909_v62 = vld [vmem:[#allocation16 + $0x160] ss:$8 sps:$4 sm:$0xff]  }
 0x5d5   :  { %3232 = vmatpush1.bf16.msra.mxu0 %v4822_v63  ;;  %3314 = vmatpush1.bf16.msra.mxu1 %v4825_v4  ;;  %v4914_v63 = vld [vmem:[#allocation16 + $0x74] ss:$8 sps:$4 sm:$0xff]  }
 0x5d6   :  { %3233 = vmatprep.subr.bf16.mxu0 %v4830_v5  ;;  %3315 = vmatprep.subr.bf16.mxu1 %v4833_v6  ;;  %v4917_v4 = vld [vmem:[#allocation16 + $0x174] ss:$8 sps:$4 sm:$0xff]   ;;  %v4912_v5 = vld [vmem:[#allocation16 + $0x70] ss:$8 sps:$4 sm:$0xff]  }
 0x5d7   :  { %v4915_v6 = vld [vmem:[#allocation16 + $0x170] ss:$8 sps:$4 sm:$0xff]  }
 0x5d9   :  { %3234 = vmatpush1.bf16.msra.mxu0 %v4828_v7  ;;  %3316 = vmatpush1.bf16.msra.mxu1 %v4831_v0  ;;  %v4920_v7 = vld [vmem:[#allocation16 + $0x84] ss:$8 sps:$4 sm:$0xff]  }
 0x5da   :  { %3235 = vmatprep.subr.bf16.mxu0 %v4836_v9  ;;  %3317 = vmatprep.subr.bf16.mxu1 %v4839_v11  ;;  %v4923_v0 = vld [vmem:[#allocation16 + $0x184] ss:$8 sps:$4 sm:$0xff]   ;;  %v4918_v9 = vld [vmem:[#allocation16 + $0x80] ss:$8 sps:$4 sm:$0xff]  }
 0x5db   :  { %v4921_v11 = vld [vmem:[#allocation16 + $0x180] ss:$8 sps:$4 sm:$0xff]  }
 0x5dd   :  { %3236 = vmatpush1.bf16.msra.mxu0 %v4834_v13  ;;  %3318 = vmatpush1.bf16.msra.mxu1 %v4837_v14  ;;  %v4926_v13 = vld [vmem:[#allocation16 + $0x94] ss:$8 sps:$4 sm:$0xff]  }
 0x5de   :  { %3237 = vmatprep.subr.bf16.mxu0 %v4842_v18  ;;  %3319 = vmatprep.subr.bf16.mxu1 %v4845_v19  ;;  %v4929_v14 = vld [vmem:[#allocation16 + $0x194] ss:$8 sps:$4 sm:$0xff]   ;;  %v4924_v18 = vld [vmem:[#allocation16 + $0x90] ss:$8 sps:$4 sm:$0xff]  }
 0x5df   :  { %v4927_v19 = vld [vmem:[#allocation16 + $0x190] ss:$8 sps:$4 sm:$0xff]  }
 0x5e1   :  { %3238 = vmatpush1.bf16.msra.mxu0 %v4840_v21  ;;  %3320 = vmatpush1.bf16.msra.mxu1 %v4843_v22  ;;  %v4932_v21 = vld [vmem:[#allocation16 + $0xa4] ss:$8 sps:$4 sm:$0xff]  }
 0x5e2   :  { %3239 = vmatprep.subr.bf16.mxu0 %v4848_v8  ;;  %3321 = vmatprep.subr.bf16.mxu1 %v4851_v23  ;;  %v4935_v22 = vld [vmem:[#allocation16 + $0x1a4] ss:$8 sps:$4 sm:$0xff]   ;;  %v4930_v8 = vld [vmem:[#allocation16 + $0xa0] ss:$8 sps:$4 sm:$0xff]  }
 0x5e3   :  { %v4933_v23 = vld [vmem:[#allocation16 + $0x1a0] ss:$8 sps:$4 sm:$0xff]  }
 0x5e5   :  { %3240 = vmatpush1.bf16.msra.mxu0 %v4846_v24  ;;  %3322 = vmatpush1.bf16.msra.mxu1 %v4849_v25  ;;  %v4938_v24 = vld [vmem:[#allocation16 + $0xb4] ss:$8 sps:$4 sm:$0xff]  }
 0x5e6   :  { %3241 = vmatprep.subr.bf16.mxu0 %v4854_v26  ;;  %3323 = vmatprep.subr.bf16.mxu1 %v4857_v27  ;;  %v4941_v25 = vld [vmem:[#allocation16 + $0x1b4] ss:$8 sps:$4 sm:$0xff]   ;;  %v4936_v26 = vld [vmem:[#allocation16 + $0xb0] ss:$8 sps:$4 sm:$0xff]  }
 0x5e7   :  { %v4939_v27 = vld [vmem:[#allocation16 + $0x1b0] ss:$8 sps:$4 sm:$0xff]  }
 0x5e9   :  { %3242 = vmatpush1.bf16.msra.mxu0 %v4852_v28  ;;  %3324 = vmatpush1.bf16.msra.mxu1 %v4855_v29  ;;  %v4944_v28 = vld [vmem:[#allocation16 + $0xc4] ss:$8 sps:$4 sm:$0xff]  }
 0x5ea   :  { %3243 = vmatprep.subr.bf16.mxu0 %v4860_v30  ;;  %3325 = vmatprep.subr.bf16.mxu1 %v4863_v1  ;;  %v4947_v29 = vld [vmem:[#allocation16 + $0x1c4] ss:$8 sps:$4 sm:$0xff]   ;;  %v4942_v30 = vld [vmem:[#allocation16 + $0xc0] ss:$8 sps:$4 sm:$0xff]  }
 0x5eb   :  { %v4945_v1 = vld [vmem:[#allocation16 + $0x1c0] ss:$8 sps:$4 sm:$0xff]  }
 0x5ed   :  { %3244 = vmatpush1.bf16.msra.mxu0 %v4858_v31  ;;  %3326 = vmatpush1.bf16.msra.mxu1 %v4861_v16  ;;  %v4950_v31 = vld [vmem:[#allocation16 + $0xd4] ss:$8 sps:$4 sm:$0xff]  }
 0x5ee   :  { %3245 = vmatprep.subr.bf16.mxu0 %v4866_v32  ;;  %3327 = vmatprep.subr.bf16.mxu1 %v4869_v34  ;;  %v4953_v16 = vld [vmem:[#allocation16 + $0x1d4] ss:$8 sps:$4 sm:$0xff]   ;;  %v4948_v32 = vld [vmem:[#allocation16 + $0xd0] ss:$8 sps:$4 sm:$0xff]  }
 0x5ef   :  { %v4951_v34 = vld [vmem:[#allocation16 + $0x1d0] ss:$8 sps:$4 sm:$0xff]  }
 0x5f1   :  { %3246 = vmatpush1.bf16.msra.mxu0 %v4864_v3  ;;  %3328 = vmatpush1.bf16.msra.mxu1 %v4867_v20  ;;  %v4956_v3 = vld [vmem:[#allocation16 + $0xe4] ss:$8 sps:$4 sm:$0xff]  }
 0x5f2   :  { %3742 = vmatprep.subr.bf16.mxu0 %v4872_v36  ;;  %3783 = vmatprep.subr.bf16.mxu1 %v4875_v37  ;;  %v4959_v20 = vld [vmem:[#allocation16 + $0x1e4] ss:$8 sps:$4 sm:$0xff]   ;;  %v4957_v36 = vld [vmem:[#allocation16 + $0x1e0] ss:$8 sps:$4 sm:$0xff]   ;;  %v4962_v37 = vld [vmem:[#allocation16 + $0xf4] ss:$8 sps:$4 sm:$0xff]  }
 0x5f4   :  { %3248 = vmatmul.mubr.bf16.vlgmr.msra.gmra.mrb[20].mxu0 %v2382_v40  ;;  %3330 = vmatmul.mubr.bf16.vlgmr.msra.gmra.mrb[20].mxu1 %v2382_v40  ;;  %v4963_v40 = vld [vmem:[#allocation16 + $0x1f0] ss:$8 sps:$4 sm:$0xff]  }
 0x5f5   :  { %3743 = vmatpush1.bf16.msra.mxu0 %v4870_v38  ;;  %3784 = vmatpush1.bf16.msra.mxu1 %v4873_v39  ;;  %v4965_v38 = vld [vmem:[#allocation16 + $0x1f4] ss:$8 sps:$4 sm:$0xff]   ;;  %v4960_v39 = vld [vmem:[#allocation16 + $0xf0] ss:$8 sps:$4 sm:$0xff]  }
 0x5f6   :  { %3744 = vmatprep.subr.bf16.mxu0 %v4878_v41  ;;  %3785 = vmatprep.subr.bf16.mxu1 %v4881_v42  ;;  %v2512_v41 = vld [vmem:[%s5531_s12] sm:$0xf] }
 0x5f7   :  { %v2517_v42 = vrot.slane %v2512_v41, %v5442_v10 }
 0x5f9   :  { %3745 = vmatpush1.bf16.msra.mxu0 %v4876_v43  ;;  %3786 = vmatpush1.bf16.msra.mxu1 %v4879_v44  ;;  %v2525_v43 = vrot.slane %v2512_v41, %v5451_v15  ;;  %v2521_v44 = vrot.slane %v2512_v41, %v5447_v12 }
 0x5fa   :  { %3746 = vmatprep.subr.bf16.mxu0 %v4884_v2  ;;  %3787 = vmatprep.subr.bf16.mxu1 %v4887_v45  ;;  %v2529_v2 = vrot.slane %v2512_v41, %v5453_v17 }
 0x5fd   :  { %3747 = vmatpush1.bf16.msra.mxu0 %v4882_v46  ;;  %3788 = vmatpush1.bf16.msra.mxu1 %v4885_v47 }
 0x5fe   :  { %3748 = vmatprep.subr.bf16.mxu0 %v4890_v48  ;;  %3789 = vmatprep.subr.bf16.mxu1 %v4893_v49 }
 0x601   :  { %3749 = vmatpush1.bf16.msra.mxu0 %v4888_v50  ;;  %3790 = vmatpush1.bf16.msra.mxu1 %v4891_v51 }
 0x602   :  { %3750 = vmatprep.subr.bf16.mxu0 %v4896_v52  ;;  %3791 = vmatprep.subr.bf16.mxu1 %v4899_v53 }
 0x605   :  { %3751 = vmatpush1.bf16.msra.mxu0 %v4894_v54  ;;  %3792 = vmatpush1.bf16.msra.mxu1 %v4897_v55 }
 0x606   :  { %3752 = vmatprep.subr.bf16.mxu0 %v4902_v56  ;;  %3793 = vmatprep.subr.bf16.mxu1 %v4905_v57 }
 0x609   :  { %3753 = vmatpush1.bf16.msra.mxu0 %v4900_v58  ;;  %3794 = vmatpush1.bf16.msra.mxu1 %v4903_v33 }
 0x60a   :  { %3754 = vmatprep.subr.bf16.mxu0 %v4908_v59  ;;  %3795 = vmatprep.subr.bf16.mxu1 %v4911_v60 }
 0x60d   :  { %3755 = vmatpush1.bf16.msra.mxu0 %v4906_v61  ;;  %3796 = vmatpush1.bf16.msra.mxu1 %v4909_v62  ;;  %v3410_v62 = vld [vmem:[%s5533_s14] sm:$0x3]  ;;  %s5226_s14 = smov [#allocation17]  }
 0x60e   :  { %3756 = vmatprep.subr.bf16.mxu0 %v4914_v63  ;;  %3797 = vmatprep.subr.bf16.mxu1 %v4917_v4  ;;  %v3415_v63 = vrot.slane %v3410_v62, %v5442_v10  ;;  %v3419_v4 = vrot.slane %v3410_v62, %v5447_v12  ;;  %s3857_s20 = sshll.u32 %s5226_s14, 4  ;;  %s3858_s20 = int_to_ptr.vmem [resolvable:$true] %s3857_s20 }
 0x60f   :  { %s5174_s11 = scalar_lea.vmem %s3858_s20, 128  ;;  %p5179_p3 = scmp.lt.s32.totalorder %s3858_s20, %s3858_s20 }
 0x610   :  { %p5175_p2 = scmp.ne.s32.totalorder %s3858_s20, %s5174_s11  ;;  %p5180_p4 = scmp.lt.s32.totalorder %s5174_s11, %s5174_s11 }
 0x611   :  { %3757 = vmatpush1.bf16.msra.mxu0 %v4912_v5  ;;  %3798 = vmatpush1.bf16.msra.mxu1 %v4915_v6 }
 0x612   :  { %3758 = vmatprep.subr.bf16.mxu0 %v4920_v7  ;;  %3799 = vmatprep.subr.bf16.mxu1 %v4923_v0  ;;  %p5181_p5 = por %p5180_p4, %p5179_p3 }
 0x614   :  { %p5182_p6 = pnand %p5181_p5, %p5175_p2 }
 0x615   :  { %3759 = vmatpush1.bf16.msra.mxu0 %v4918_v9  ;;  %3800 = vmatpush1.bf16.msra.mxu1 %v4921_v11 }
 0x616   :  { %3760 = vmatprep.subr.bf16.mxu0 %v4926_v13  ;;  %3801 = vmatprep.subr.bf16.mxu1 %v4929_v14 }
 0x619   :  { %3761 = vmatpush1.bf16.msra.mxu0 %v4924_v18  ;;  %3802 = vmatpush1.bf16.msra.mxu1 %v4927_v19 }
 0x61a   :  { %3762 = vmatprep.subr.bf16.mxu0 %v4932_v21  ;;  %3803 = vmatprep.subr.bf16.mxu1 %v4935_v22 }
 0x61d   :  { %3763 = vmatpush1.bf16.msra.mxu0 %v4930_v8  ;;  %3804 = vmatpush1.bf16.msra.mxu1 %v4933_v23 }
 0x61e   :  { %3764 = vmatprep.subr.bf16.mxu0 %v4938_v24  ;;  %3805 = vmatprep.subr.bf16.mxu1 %v4941_v25 }
 0x621   :  { %3765 = vmatpush1.bf16.msra.mxu0 %v4936_v26  ;;  %3806 = vmatpush1.bf16.msra.mxu1 %v4939_v27 }
 0x622   :  { %3766 = vmatprep.subr.bf16.mxu0 %v4944_v28  ;;  %3807 = vmatprep.subr.bf16.mxu1 %v4947_v29 }
 0x625   :  { %3767 = vmatpush1.bf16.msra.mxu0 %v4942_v30  ;;  %3808 = vmatpush1.bf16.msra.mxu1 %v4945_v1 }
 0x626   :  { %3768 = vmatprep.subr.bf16.mxu0 %v4950_v31  ;;  %3809 = vmatprep.subr.bf16.mxu1 %v4953_v16 }
 0x629   :  { %3769 = vmatpush1.bf16.msra.mxu0 %v4948_v32  ;;  %3810 = vmatpush1.bf16.msra.mxu1 %v4951_v34 }
 0x62a   :  { %3770 = vmatprep.subr.bf16.mxu0 %v4956_v3  ;;  %3811 = vmatprep.subr.bf16.mxu1 %v4959_v20  ;;  %v3839_v20 = vld [vmem:[#allocation7] sm:$0xff] }
 0x62d   :  { %3771 = vmatpush1.bf16.msra.mxu0 %v4954_v35  ;;  %3812 = vmatpush1.bf16.msra.mxu1 %v4957_v36 }
 0x62e   :  { %3772 = vmatprep.subr.bf16.mxu0 %v4962_v37  ;;  %3813 = vmatprep.subr.bf16.mxu1 %v4965_v38 }
 0x631   :  { %3773 = vmatpush1.bf16.msra.mxu0 %v4960_v39  ;;  %3814 = vmatpush1.bf16.msra.mxu1 %v4963_v40 }
 0x6c7   :  { %v3249_v45 = vpop.f32.mrb[20].mxu0  ;;  %v3331_v46 = vpop.f32.mrb[20].mxu1 }
 0x6c8   :  { %v4367_v47 = vadd.f32 %v3249_v45, %v2517_v42  ;;  %v4369_v48 = vadd.f32 %v3331_v46, %v2525_v43  ;;  %v3251_v49 = vpop.f32.mrb[21].mxu0  ;;  %v3333_v50 = vpop.f32.mrb[21].mxu1 }
 0x6c9   :  { %v4368_v51 = vadd.f32 %v3251_v49, %v2521_v44  ;;  %v4370_v52 = vadd.f32 %v3333_v50, %v2529_v2  ;;  %v3253_v53 = vpop.f32.mrb[22].mxu0  ;;  %v3335_v54 = vpop.f32.mrb[22].mxu1 }
 0x6ca   :  { %v3338_v55 = vmax.f32 %v4367_v47, 0.0  ;;  %v3340_v56 = vmax.f32 %v4369_v48, 0.0  ;;  %v3254_v57 = vpop.f32.mrb[23].mxu0  ;;  %v3336_v58 = vpop.f32.mrb[23].mxu1 }
 0x6cb   :  { %v3339_v33 = vmax.f32 %v4368_v51, 0.0  ;;  %v3341_v15 = vmax.f32 %v4370_v52, 0.0 }
 0x6cc   :  { %v3342_v61 = vpack.c.bf16 %v3338_v55, %v3338_v55  ;;  %v3344_v17 = vpack.c.bf16 %v3340_v56, %v3340_v56 }
 0x6cd   :  { %v3343_v59 = vpack.c.bf16 %v3339_v33, %v3339_v33  ;;  %v3345_v60 = vpack.c.bf16 %v3341_v15, %v3341_v15 }
 0x6cf   :  { %3774 = vmatprep.mubr.bf16.mxu0 %v3343_v59  ;;  %3815 = vmatprep.mubr.bf16.mxu1 %v3345_v60 }
 0x6d0   :  { %3775 = vmatmul.mubr.bf16.vlgmr.msra.gmra.mrb[24].mxu0 %v3342_v61  ;;  %3816 = vmatmul.mubr.bf16.vlgmr.msra.gmra.mrb[24].mxu1 %v3344_v17 }
 0x7a3   :  { %v3776_v5 = vpop.f32.mrb[24].mxu0  ;;  %v3817_v6 = vpop.f32.mrb[24].mxu1 }
 0x7a4   :  { %v3777_v7 = vadd.f32 %v3776_v5, %v3415_v63  ;;  %v3778_v0 = vpop.f32.mrb[25].mxu0  ;;  %v3819_v9 = vpop.f32.mrb[25].mxu1 }
 0x7a5   :  { %v3779_v11 = vadd.f32 %v3778_v0, %v3419_v4  ;;  %v3780_v13 = vpop.f32.mrb[26].mxu0  ;;  %v3821_v14 = vpop.f32.mrb[26].mxu1 }
 0x7a6   :  { %v3818_v18 = vadd.f32 %v3817_v6, %v3777_v7  ;;  %v3781_v19 = vpop.f32.mrb[27].mxu0  ;;  %v3822_v21 = vpop.f32.mrb[27].mxu1 }
 0x7a7   :  { %v3820_v22 = vadd.f32 %v3819_v9, %v3779_v11 }
 0x7a9   :  { %v3825_v8 = vand.u32 2147483647, %v3820_v22  ;;  %v3824_v1 = vmax.f32 %v3820_v22, 0.0 }
 0x7ab   :  { %v3826_v23 = vsub.f32 0.0, %v3825_v8 }
 0x7ad   :  { %v3827_v24 = vmul.f32 1.442695, %v3826_v23 }
 0x7af   :  { %4970 = vpow2.f32 %v3827_v24 }
 0x7b9   :  { %v4971_v25 = vpop.eup %4970 }
 0x7ba   :  { %v3829_v10 = vadd.f32 1.0, %v4971_v25  ;;  %v3832_v12 = vmul.f32 -0.5, %v4971_v25  ;;  %v3835_v27 = vand.u32 2147483647, %v4971_v25 }
 0x7bc   :  { %4972 = vlog2.f32 %v3829_v10  ;;  %v3833_v26 = vadd.f32 1.0, %v3832_v12  ;;  %vm3836_vm1 = vcmp.lt.f32.partialorder %v3835_v27, 0.0004427343 }
 0x7be   :  { %v3834_v30 = vmul.f32 %v4971_v25, %v3833_v26 }
 0x7c6   :  { %v4973_v28 = vpop.eup %4972 }
 0x7c7   :  { %v3831_v29 = vmul.f32 0.6931472, %v4973_v28 }
 0x7c9   :  { %v3837_v31 = vsel %vm3836_vm1, %v3834_v30, %v3831_v29 }
 0x7ca   :  { %v3838_v16 = vadd.f32 %v3837_v31, %v3824_v1 }
 0x7cc   :  { %v3840_v32 = vadd.f32 1e-10, %v3838_v16 }
 0x7ce   :  { %4974 = vrsqrt.f32 %v3840_v32  ;;  %vm3843_vm2 = vcmp.eq.f32.partialorder %v3840_v32, inf  ;;  %v3846_v35 = vand.u32 2147483648, %v3840_v32  ;;  %vm3845_vm3 = vcmp.eq.f32.partialorder %v3840_v32, 0.0 }
 0x7d8   :  { %v4975_v34 = vpop.eup %4974 }
 0x7d9   :  { %v3842_v3 = vmul.f32 %v4975_v34, %v3840_v32 }
 0x7db   :  { %v3844_v36 = vsel %vm3843_vm2, %v3840_v32, %v3842_v3 }
 0x7dc   :  { %v3847_v37 = vsel %vm3845_vm3, %v3846_v35, %v3844_v36 }
 0x7dd   :  { %v3848_v38 = vmul.f32 %v3847_v37, %v3839_v20 }
 0x7df   :  { %v3849_v39 = vadd.f32 %v3848_v38, %v3818_v18 }
 0x7e1   :  { %3850 = vst [vmem:[#allocation17] sm:$0xff] %v3849_v39 }
 0x7e2   :  { %5185 = shalt.err (!%p5182_p6)
}
 0x7e3   :  { %s5186_s27 = scalar_lea.hbm %s5534_s15, 128 }
 0x7e4   :  { %p5187_p7 = scmp.ne.s32.totalorder %s5534_s15, %s5186_s27  ;;  %p5190_p8 = scmp.lt.u32.totalorder %s5186_s27, %s5534_s15 }
 0x7e6   :  { %p5192_p9 = pnand %p5190_p8, %p5187_p7 }
 0x7e8   :  { %5195 = shalt.err (!%p5192_p9)
}
 0x7e9   :  { %3860 = dma.vmem_to_hbm [thread:$0]  %s3858_s20, 128, %s5534_s15, [#allocation4]  }
 0x7ea   :  { %5206 = dma.done.wait [#allocation4], 128  }
 0x7eb   :  { %5207 = vsyncadd [#allocation4], 4294967168 }
 0x7ec   :  { %3864 = vsyncpa [#allocation3], 1 }
 0x7ed   :  { %3865 = vsyncpa [#allocation6], 1 }
 0x7ee   :  { %3866 = vsyncpa [#allocation9], 1 }
 0x7ef   :  { %3867 = vsyncpa [#allocation12], 1 }
 0x7f0   :  { %3868 = vsyncpa [#allocation15], 1 }
 0x7f1   :  { %3869 = vsyncpa [#allocation4], 1 }

</bundles_post_ra>
